<compile_context>
chip_gen: v7x
topology: tpu7x:2x2x1
jax: 0.10.0
libtpu: 0.0.40
codegen_flags: <defaults>
</compile_context>

<pallas_src>
import functools

import jax
import jax.numpy as jnp
from jax.experimental import pallas as pl
from jax.experimental.pallas import tpu as pltpu


def _prediction_head_kernel(x_ref, w_ref, b_ref, out_ref, *,
                            tile_h, chunk_h, pad_w):
    # x_ref  : (1, Hp+2, Wp, C)  padded NHWC input (bf16), full image of batch b
    # w_ref  : (3, 3, C, COUT)   fused cls+reg weights (HWIO, zero-padded, bf16)
    # b_ref  : (1, COUT)         fused bias (f32, zero-padded)
    # out_ref: (1, TH*Wp, COUT)  flat, lane-dense, padded-width output tile
    TH, CH, Wp = tile_h, chunk_h, pad_w
    C = x_ref.shape[-1]
    L = CH * Wp                          # flat rows per chunk (multiple of 16)

    t = pl.program_id(1)
    row0 = pl.multiple_of(t * TH, TH)    # first padded-coord input row of tile
    bias = b_ref[...]                    # (1, COUT) f32, hoisted out of loops

    for c in range(TH // CH):            # row chunks: acc fits in <=~16 vregs
        r0 = row0 + c * CH
        acc = None
        for dx in range(3):              # dx outer: sum dy BEFORE roll/acc add
            p = None
            for dy in range(3):
                # Slice along the leading (un-tiled) H axis only; Wp % 16 == 0
                # makes this flatten layout-preserving for bf16.
                s = x_ref[0, pl.ds(r0 + dy, CH), :, :].reshape(L, C)
                q = jnp.dot(s, w_ref[dy, dx],
                            preferred_element_type=jnp.float32)
                p = q if p is None else p + q
            if dx:
                # dx shift applied to the matmul result via XLU sublane roll;
                # wrapped rows land only in discarded pad columns (Wp >= W+2).
                p = pltpu.roll(p, shift=L - dx, axis=0)
            acc = p if acc is None else acc + p
        out_ref[0, pl.ds(c * L, L), :] = (acc + bias).astype(out_ref.dtype)


def _vmem_bytes(shape, dtype):
    """Tile-padded VMEM footprint of one buffer (lane dim -> 128, sublane dim
    -> 8/16/32 depending on itemsize)."""
    itemsize = jnp.dtype(dtype).itemsize
    sub = max(8, 32 // itemsize)
    dims = list(shape)
    dims[-1] = pl.cdiv(dims[-1], 128) * 128
    if len(dims) >= 2:
        dims[-2] = pl.cdiv(dims[-2], sub) * sub
    n = itemsize
    for d in dims:
        n *= d
    return n


def prediction_head_forward(feature_map_nchw, params, num_classes,
                            num_anchors_per_location, *, tile_h=8,
                            compute_dtype=jnp.bfloat16,
                            out_dtype=jnp.bfloat16):
    """Mirrors PredictionHead.forward.

    feature_map_nchw: (N, C, H, W) like the PyTorch module.
    Returns (cls_preds, reg_preds) with shapes
      (N, H*W*A, num_classes + 1) and (N, H*W*A, 5), in feature_map's dtype.
    """
    wc, bc, wr, br = (params["w_cls"], params["b_cls"],
                      params["w_reg"], params["b_reg"])
    N, C, H, W = feature_map_nchw.shape
    Ccls = wc.shape[-1]
    Creg = wr.shape[-1]
    Ctot = Ccls + Creg
    A = num_anchors_per_location

    # Lane-dense fused output channels (multiple of 128 -> unmasked vst).
    COUT = pl.cdiv(Ctot, 128) * 128
    # Padded width: 1-left halo + >=1 right halo, rounded to the bf16 sublane
    # tile (16) so the in-kernel flatten is a layout no-op.
    Wp = pl.cdiv(W + 2, 16) * 16
    # Tile height; H is padded up so odd H never forces TH = H.
    TH = max(1, min(tile_h, H))
    Hp = pl.cdiv(H, TH) * TH
    # Row-chunk height: keep the f32 chunk accumulator <= ~16 vregs (64 KiB).
    CH = 1
    for ch in range(1, TH + 1):
        if TH % ch == 0 and ch * Wp * COUT * 4 <= 64 * 1024:
            CH = ch

    # Fuse the two heads: concat along Cout, zero-pad to COUT, cast for the MXU.
    w_fused = jnp.concatenate([wc, wr], axis=-1)
    w_fused = jnp.pad(w_fused, ((0, 0), (0, 0), (0, 0), (0, COUT - Ctot)))
    w_fused = w_fused.astype(compute_dtype)
    b_fused = jnp.pad(jnp.concatenate([bc, br]), (0, COUT - Ctot))
    b_fused = b_fused.reshape(1, COUT).astype(jnp.float32)

    # Prologue glue: NCHW -> NHWC, halo + alignment pad, bf16 cast (one fused
    # XLA pass).  TODO(synk): fold this into the kernel to drop the HBM trip.
    x_nhwc = jnp.transpose(feature_map_nchw, (0, 2, 3, 1))
    x_pad = jnp.pad(x_nhwc,
                    ((0, 0), (1, 1 + Hp - H), (1, Wp - W - 1), (0, 0)))
    x_pad = x_pad.astype(compute_dtype)

    # Scoped-VMEM budget from the real (tile-padded) footprint: double-buffered
    # input / weights / bias / output tile.  Protects v5e (16 MiB default
    # scoped) and v7x (32 MiB default scoped, 64 MiB physical).
    need = (2 * _vmem_bytes((1, Hp + 2, Wp, C), compute_dtype)
            + 2 * _vmem_bytes((3, 3, C, COUT), compute_dtype)
            + 2 * _vmem_bytes((1, COUT), jnp.float32)
            + 2 * _vmem_bytes((1, TH * Wp, COUT), out_dtype))
    vmem_limit = int(min(max(need + (4 << 20), 16 << 20), 100 << 20))

    grid = (N, Hp // TH)
    kernel = functools.partial(_prediction_head_kernel,
                               tile_h=TH, chunk_h=CH, pad_w=Wp)
    # NOTE: the weight/bias blocks are grid-invariant; pipeline_mode=
    # pl.Buffered(1) on them would shave a bit more resident VMEM on v7x.
    out = pl.pallas_call(
        kernel,
        out_shape=jax.ShapeDtypeStruct((N, Hp * Wp, COUT), out_dtype),
        grid_spec=pltpu.PrefetchScalarGridSpec(
            num_scalar_prefetch=0,
            grid=grid,
            in_specs=[
                # Full padded image per batch element; the block index is
                # invariant across the H-tile axis so it is DMA'd once per b.
                pl.BlockSpec((1, Hp + 2, Wp, C), lambda b, t: (b, 0, 0, 0)),
                # Grid-invariant fused weights / bias (DMA'd once, tiny).
                pl.BlockSpec((3, 3, C, COUT), lambda b, t: (0, 0, 0, 0)),
                pl.BlockSpec((1, COUT), lambda b, t: (0, 0)),
            ],
            out_specs=pl.BlockSpec((1, TH * Wp, COUT), lambda b, t: (b, t, 0)),
        ),
        compiler_params=pltpu.CompilerParams(
            dimension_semantics=("parallel", "parallel"),
            vmem_limit_bytes=vmem_limit),
    )(x_pad, w_fused, b_fused)

    # Crop padding + split heads.  This slice pass is a real HBM copy (not free
    # metadata); it is kept small by the bf16 / padded-width kernel output.
    out4 = out.reshape(N, Hp, Wp, COUT)
    ret_dtype = feature_map_nchw.dtype
    cls_preds = (out4[:, :H, :W, :Ccls].astype(ret_dtype)
                 .reshape(N, H * W * A, num_classes + 1))
    reg_preds = (out4[:, :H, :W, Ccls:Ctot].astype(ret_dtype)
                 .reshape(N, H * W * A, 5))
    return cls_preds, reg_preds


def init_params(key, in_channels, num_anchors_per_location, num_classes):
    """Deterministic parameter init (PyTorch-Conv2d-style uniform bounds)."""
    Ccls = num_anchors_per_location * (num_classes + 1)
    Creg = num_anchors_per_location * (4 + 1)
    fan_in = in_channels * 3 * 3
    bound = 1.0 / jnp.sqrt(fan_in)
    k1, k2, k3, k4 = jax.random.split(key, 4)
    # Weights in HWIO layout: W[dy, dx, c_in, c_out]
    w_cls = jax.random.uniform(k1, (3, 3, in_channels, Ccls),
                               jnp.float32, -bound, bound)
    b_cls = jax.random.uniform(k2, (Ccls,), jnp.float32, -bound, bound)
    w_reg = jax.random.uniform(k3, (3, 3, in_channels, Creg),
                               jnp.float32, -bound, bound)
    b_reg = jax.random.uniform(k4, (Creg,), jnp.float32, -bound, bound)
    return {"w_cls": w_cls, "b_cls": b_cls, "w_reg": w_reg, "b_reg": b_reg}


def _reference_forward(x_nchw, params, num_classes, A):
    """Pure-JAX reference (lax.conv, f32) for a correctness check."""
    def conv(w_hwio, b):
        w_oihw = jnp.transpose(w_hwio, (3, 2, 0, 1))
        y = jax.lax.conv_general_dilated(
            x_nchw, w_oihw, window_strides=(1, 1), padding=((1, 1), (1, 1)),
            dimension_numbers=("NCHW", "OIHW", "NCHW"),
            precision=jax.lax.Precision.HIGHEST)
        return y + b[None, :, None, None]

    N, _, H, W = x_nchw.shape
    cls = conv(params["w_cls"], params["b_cls"])
    reg = conv(params["w_reg"], params["b_reg"])
    cls = jnp.transpose(cls, (0, 2, 3, 1)).reshape(N, H * W * A,
                                                   num_classes + 1)
    reg = jnp.transpose(reg, (0, 2, 3, 1)).reshape(N, H * W * A, 5)
    return cls, reg


if __name__ == "__main__":
    # Small shapes consistent with the module's forward.
    batch, in_channels, H, W = 2, 4, 16, 16
    num_anchors = 3
    num_classes = 4

    key = jax.random.PRNGKey(0)
    k_x, k_p = jax.random.split(key)
    x = jax.random.normal(k_x, (batch, in_channels, H, W), jnp.float32)
    params = init_params(k_p, in_channels, num_anchors, num_classes)

    fwd = jax.jit(functools.partial(prediction_head_forward,
                                    num_classes=num_classes,
                                    num_anchors_per_location=num_anchors))
    cls_preds, reg_preds = fwd(x, params)
    jax.block_until_ready((cls_preds, reg_preds))

    # Sanity-check shapes and numerics against a pure-JAX f32 reference.
    assert cls_preds.shape == (batch, H * W * num_anchors, num_classes + 1)
    assert reg_preds.shape == (batch, H * W * num_anchors, 5)
    cls_ref, reg_ref = _reference_forward(x, params, num_classes, num_anchors)
    # bf16 MXU inputs + bf16 kernel writeback with f32 accumulation.
    assert jnp.allclose(cls_preds, cls_ref, atol=3e-2, rtol=3e-2)
    assert jnp.allclose(reg_preds, reg_ref, atol=3e-2, rtol=3e-2)

    print("KERNEL_OK")
</pallas_src>

<mosaic_0001>
module attributes {stable_mosaic.version = 11 : i64} {
  func.func @_prediction_head_kernel(%arg0: i32, %arg1: i32, %arg2: memref<1x18x32x4xbf16, #tpu.memory_space<vmem>>, %arg3: memref<3x3x4x128xbf16, #tpu.memory_space<vmem>>, %arg4: memref<1x128xf32, #tpu.memory_space<vmem>>, %arg5: memref<1x256x128xbf16, #tpu.memory_space<vmem>>) attributes {dimension_semantics = [#tpu.dimension_semantics<parallel>, #tpu.dimension_semantics<parallel>], iteration_bounds = array<i64: 2, 2>, scalar_prefetch = 0 : i64, scratch_operands = 0 : i64, tpu.core_type = #tpu.core_type<tc>, window_params = [{transform_indices = @transform_0, window_bounds = array<i64: 1, 18, 32, 4>}, {pipeline_mode = #tpu.pipeline_mode<synchronous>, transform_indices = @transform_1, window_bounds = array<i64: 3, 3, 4, 128>}, {pipeline_mode = #tpu.pipeline_mode<synchronous>, transform_indices = @transform_2, window_bounds = array<i64: 1, 128>}, {transform_indices = @transform_3, window_bounds = array<i64: 1, 256, 128>}]} {
    %c8_i32 = arith.constant 8 : i32
    %0 = arith.muli %arg1, %c8_i32 : i32
    %1 = tpu.assume_multiple %0, 8 : i32
    %c0 = arith.constant 0 : index
    %c0_0 = arith.constant 0 : index
    %2 = vector.load %arg4[%c0, %c0_0] : memref<1x128xf32, #tpu.memory_space<vmem>>, vector<1x128xf32>
    %c0_i32 = arith.constant 0 : i32
    %3 = arith.addi %1, %c0_i32 : i32
    %c0_i32_1 = arith.constant 0 : i32
    %4 = arith.addi %3, %c0_i32_1 : i32
    %c0_2 = arith.constant 0 : index
    %5 = arith.index_cast %4 : i32 to index
    %c0_3 = arith.constant 0 : index
    %c0_4 = arith.constant 0 : index
    %6 = vector.load %arg2[%c0_2, %5, %c0_3, %c0_4] : memref<1x18x32x4xbf16, #tpu.memory_space<vmem>>, vector<1x4x32x4xbf16>
    %7 = vector.shape_cast %6 : vector<1x4x32x4xbf16> to vector<4x32x4xbf16>
    %8 = vector.shape_cast %7 : vector<4x32x4xbf16> to vector<128x4xbf16>
    %c0_5 = arith.constant 0 : index
    %c0_6 = arith.constant 0 : index
    %c0_7 = arith.constant 0 : index
    %c0_8 = arith.constant 0 : index
    %9 = vector.load %arg3[%c0_5, %c0_6, %c0_7, %c0_8] : memref<3x3x4x128xbf16, #tpu.memory_space<vmem>>, vector<1x1x4x128xbf16>
    %10 = vector.shape_cast %9 : vector<1x1x4x128xbf16> to vector<4x128xbf16>
    %cst = arith.constant dense<0.000000e+00> : vector<128x128xf32>
    %11 = tpu.matmul %8, %10, %cst {dimension_numbers = #tpu.dot_dimension_numbers<[1], [0], [0], [1], [0, 0, 1, 1], [], []>} : vector<128x4xbf16>, vector<4x128xbf16>, vector<128x128xf32> -> vector<128x128xf32>
    %c1_i32 = arith.constant 1 : i32
    %12 = arith.addi %3, %c1_i32 : i32
    %c0_9 = arith.constant 0 : index
    %13 = arith.index_cast %12 : i32 to index
    %c0_10 = arith.constant 0 : index
    %c0_11 = arith.constant 0 : index
    %14 = vector.load %arg2[%c0_9, %13, %c0_10, %c0_11] : memref<1x18x32x4xbf16, #tpu.memory_space<vmem>>, vector<1x4x32x4xbf16>
    %15 = vector.shape_cast %14 : vector<1x4x32x4xbf16> to vector<4x32x4xbf16>
    %16 = vector.shape_cast %15 : vector<4x32x4xbf16> to vector<128x4xbf16>
    %c1 = arith.constant 1 : index
    %c0_12 = arith.constant 0 : index
    %c0_13 = arith.constant 0 : index
    %c0_14 = arith.constant 0 : index
    %17 = vector.load %arg3[%c1, %c0_12, %c0_13, %c0_14] : memref<3x3x4x128xbf16, #tpu.memory_space<vmem>>, vector<1x1x4x128xbf16>
    %18 = vector.shape_cast %17 : vector<1x1x4x128xbf16> to vector<4x128xbf16>
    %cst_15 = arith.constant dense<0.000000e+00> : vector<128x128xf32>
    %19 = tpu.matmul %16, %18, %cst_15 {dimension_numbers = #tpu.dot_dimension_numbers<[1], [0], [0], [1], [0, 0, 1, 1], [], []>} : vector<128x4xbf16>, vector<4x128xbf16>, vector<128x128xf32> -> vector<128x128xf32>
    %20 = arith.addf %11, %19 : vector<128x128xf32>
    %c2_i32 = arith.constant 2 : i32
    %21 = arith.addi %3, %c2_i32 : i32
    %c0_16 = arith.constant 0 : index
    %22 = arith.index_cast %21 : i32 to index
    %c0_17 = arith.constant 0 : index
    %c0_18 = arith.constant 0 : index
    %23 = vector.load %arg2[%c0_16, %22, %c0_17, %c0_18] : memref<1x18x32x4xbf16, #tpu.memory_space<vmem>>, vector<1x4x32x4xbf16>
    %24 = vector.shape_cast %23 : vector<1x4x32x4xbf16> to vector<4x32x4xbf16>
    %25 = vector.shape_cast %24 : vector<4x32x4xbf16> to vector<128x4xbf16>
    %c2 = arith.constant 2 : index
    %c0_19 = arith.constant 0 : index
    %c0_20 = arith.constant 0 : index
    %c0_21 = arith.constant 0 : index
    %26 = vector.load %arg3[%c2, %c0_19, %c0_20, %c0_21] : memref<3x3x4x128xbf16, #tpu.memory_space<vmem>>, vector<1x1x4x128xbf16>
    %27 = vector.shape_cast %26 : vector<1x1x4x128xbf16> to vector<4x128xbf16>
    %cst_22 = arith.constant dense<0.000000e+00> : vector<128x128xf32>
    %28 = tpu.matmul %25, %27, %cst_22 {dimension_numbers = #tpu.dot_dimension_numbers<[1], [0], [0], [1], [0, 0, 1, 1], [], []>} : vector<128x4xbf16>, vector<4x128xbf16>, vector<128x128xf32> -> vector<128x128xf32>
    %29 = arith.addf %20, %28 : vector<128x128xf32>
    %c0_i32_23 = arith.constant 0 : i32
    %30 = arith.addi %3, %c0_i32_23 : i32
    %c0_24 = arith.constant 0 : index
    %31 = arith.index_cast %30 : i32 to index
    %c0_25 = arith.constant 0 : index
    %c0_26 = arith.constant 0 : index
    %32 = vector.load %arg2[%c0_24, %31, %c0_25, %c0_26] : memref<1x18x32x4xbf16, #tpu.memory_space<vmem>>, vector<1x4x32x4xbf16>
    %33 = vector.shape_cast %32 : vector<1x4x32x4xbf16> to vector<4x32x4xbf16>
    %34 = vector.shape_cast %33 : vector<4x32x4xbf16> to vector<128x4xbf16>
    %c0_27 = arith.constant 0 : index
    %c1_28 = arith.constant 1 : index
    %c0_29 = arith.constant 0 : index
    %c0_30 = arith.constant 0 : index
    %35 = vector.load %arg3[%c0_27, %c1_28, %c0_29, %c0_30] : memref<3x3x4x128xbf16, #tpu.memory_space<vmem>>, vector<1x1x4x128xbf16>
    %36 = vector.shape_cast %35 : vector<1x1x4x128xbf16> to vector<4x128xbf16>
    %cst_31 = arith.constant dense<0.000000e+00> : vector<128x128xf32>
    %37 = tpu.matmul %34, %36, %cst_31 {dimension_numbers = #tpu.dot_dimension_numbers<[1], [0], [0], [1], [0, 0, 1, 1], [], []>} : vector<128x4xbf16>, vector<4x128xbf16>, vector<128x128xf32> -> vector<128x128xf32>
    %c1_i32_32 = arith.constant 1 : i32
    %38 = arith.addi %3, %c1_i32_32 : i32
    %c0_33 = arith.constant 0 : index
    %39 = arith.index_cast %38 : i32 to index
    %c0_34 = arith.constant 0 : index
    %c0_35 = arith.constant 0 : index
    %40 = vector.load %arg2[%c0_33, %39, %c0_34, %c0_35] : memref<1x18x32x4xbf16, #tpu.memory_space<vmem>>, vector<1x4x32x4xbf16>
    %41 = vector.shape_cast %40 : vector<1x4x32x4xbf16> to vector<4x32x4xbf16>
    %42 = vector.shape_cast %41 : vector<4x32x4xbf16> to vector<128x4xbf16>
    %c1_36 = arith.constant 1 : index
    %c1_37 = arith.constant 1 : index
    %c0_38 = arith.constant 0 : index
    %c0_39 = arith.constant 0 : index
    %43 = vector.load %arg3[%c1_36, %c1_37, %c0_38, %c0_39] : memref<3x3x4x128xbf16, #tpu.memory_space<vmem>>, vector<1x1x4x128xbf16>
    %44 = vector.shape_cast %43 : vector<1x1x4x128xbf16> to vector<4x128xbf16>
    %cst_40 = arith.constant dense<0.000000e+00> : vector<128x128xf32>
    %45 = tpu.matmul %42, %44, %cst_40 {dimension_numbers = #tpu.dot_dimension_numbers<[1], [0], [0], [1], [0, 0, 1, 1], [], []>} : vector<128x4xbf16>, vector<4x128xbf16>, vector<128x128xf32> -> vector<128x128xf32>
    %46 = arith.addf %37, %45 : vector<128x128xf32>
    %c2_i32_41 = arith.constant 2 : i32
    %47 = arith.addi %3, %c2_i32_41 : i32
    %c0_42 = arith.constant 0 : index
    %48 = arith.index_cast %47 : i32 to index
    %c0_43 = arith.constant 0 : index
    %c0_44 = arith.constant 0 : index
    %49 = vector.load %arg2[%c0_42, %48, %c0_43, %c0_44] : memref<1x18x32x4xbf16, #tpu.memory_space<vmem>>, vector<1x4x32x4xbf16>
    %50 = vector.shape_cast %49 : vector<1x4x32x4xbf16> to vector<4x32x4xbf16>
    %51 = vector.shape_cast %50 : vector<4x32x4xbf16> to vector<128x4xbf16>
    %c2_45 = arith.constant 2 : index
    %c1_46 = arith.constant 1 : index
    %c0_47 = arith.constant 0 : index
    %c0_48 = arith.constant 0 : index
    %52 = vector.load %arg3[%c2_45, %c1_46, %c0_47, %c0_48] : memref<3x3x4x128xbf16, #tpu.memory_space<vmem>>, vector<1x1x4x128xbf16>
    %53 = vector.shape_cast %52 : vector<1x1x4x128xbf16> to vector<4x128xbf16>
    %cst_49 = arith.constant dense<0.000000e+00> : vector<128x128xf32>
    %54 = tpu.matmul %51, %53, %cst_49 {dimension_numbers = #tpu.dot_dimension_numbers<[1], [0], [0], [1], [0, 0, 1, 1], [], []>} : vector<128x4xbf16>, vector<4x128xbf16>, vector<128x128xf32> -> vector<128x128xf32>
    %55 = arith.addf %46, %54 : vector<128x128xf32>
    %c127_i32 = arith.constant 127 : i32
    %56 = tpu.dynamic_rotate %55 by %c127_i32 dim 0 : vector<128x128xf32>, i32 -> vector<128x128xf32>
    %57 = arith.addf %29, %56 : vector<128x128xf32>
    %c0_i32_50 = arith.constant 0 : i32
    %58 = arith.addi %3, %c0_i32_50 : i32
    %c0_51 = arith.constant 0 : index
    %59 = arith.index_cast %58 : i32 to index
    %c0_52 = arith.constant 0 : index
    %c0_53 = arith.constant 0 : index
    %60 = vector.load %arg2[%c0_51, %59, %c0_52, %c0_53] : memref<1x18x32x4xbf16, #tpu.memory_space<vmem>>, vector<1x4x32x4xbf16>
    %61 = vector.shape_cast %60 : vector<1x4x32x4xbf16> to vector<4x32x4xbf16>
    %62 = vector.shape_cast %61 : vector<4x32x4xbf16> to vector<128x4xbf16>
    %c0_54 = arith.constant 0 : index
    %c2_55 = arith.constant 2 : index
    %c0_56 = arith.constant 0 : index
    %c0_57 = arith.constant 0 : index
    %63 = vector.load %arg3[%c0_54, %c2_55, %c0_56, %c0_57] : memref<3x3x4x128xbf16, #tpu.memory_space<vmem>>, vector<1x1x4x128xbf16>
    %64 = vector.shape_cast %63 : vector<1x1x4x128xbf16> to vector<4x128xbf16>
    %cst_58 = arith.constant dense<0.000000e+00> : vector<128x128xf32>
    %65 = tpu.matmul %62, %64, %cst_58 {dimension_numbers = #tpu.dot_dimension_numbers<[1], [0], [0], [1], [0, 0, 1, 1], [], []>} : vector<128x4xbf16>, vector<4x128xbf16>, vector<128x128xf32> -> vector<128x128xf32>
    %c1_i32_59 = arith.constant 1 : i32
    %66 = arith.addi %3, %c1_i32_59 : i32
    %c0_60 = arith.constant 0 : index
    %67 = arith.index_cast %66 : i32 to index
    %c0_61 = arith.constant 0 : index
    %c0_62 = arith.constant 0 : index
    %68 = vector.load %arg2[%c0_60, %67, %c0_61, %c0_62] : memref<1x18x32x4xbf16, #tpu.memory_space<vmem>>, vector<1x4x32x4xbf16>
    %69 = vector.shape_cast %68 : vector<1x4x32x4xbf16> to vector<4x32x4xbf16>
    %70 = vector.shape_cast %69 : vector<4x32x4xbf16> to vector<128x4xbf16>
    %c1_63 = arith.constant 1 : index
    %c2_64 = arith.constant 2 : index
    %c0_65 = arith.constant 0 : index
    %c0_66 = arith.constant 0 : index
    %71 = vector.load %arg3[%c1_63, %c2_64, %c0_65, %c0_66] : memref<3x3x4x128xbf16, #tpu.memory_space<vmem>>, vector<1x1x4x128xbf16>
    %72 = vector.shape_cast %71 : vector<1x1x4x128xbf16> to vector<4x128xbf16>
    %cst_67 = arith.constant dense<0.000000e+00> : vector<128x128xf32>
    %73 = tpu.matmul %70, %72, %cst_67 {dimension_numbers = #tpu.dot_dimension_numbers<[1], [0], [0], [1], [0, 0, 1, 1], [], []>} : vector<128x4xbf16>, vector<4x128xbf16>, vector<128x128xf32> -> vector<128x128xf32>
    %74 = arith.addf %65, %73 : vector<128x128xf32>
    %c2_i32_68 = arith.constant 2 : i32
    %75 = arith.addi %3, %c2_i32_68 : i32
    %c0_69 = arith.constant 0 : index
    %76 = arith.index_cast %75 : i32 to index
    %c0_70 = arith.constant 0 : index
    %c0_71 = arith.constant 0 : index
    %77 = vector.load %arg2[%c0_69, %76, %c0_70, %c0_71] : memref<1x18x32x4xbf16, #tpu.memory_space<vmem>>, vector<1x4x32x4xbf16>
    %78 = vector.shape_cast %77 : vector<1x4x32x4xbf16> to vector<4x32x4xbf16>
    %79 = vector.shape_cast %78 : vector<4x32x4xbf16> to vector<128x4xbf16>
    %c2_72 = arith.constant 2 : index
    %c2_73 = arith.constant 2 : index
    %c0_74 = arith.constant 0 : index
    %c0_75 = arith.constant 0 : index
    %80 = vector.load %arg3[%c2_72, %c2_73, %c0_74, %c0_75] : memref<3x3x4x128xbf16, #tpu.memory_space<vmem>>, vector<1x1x4x128xbf16>
    %81 = vector.shape_cast %80 : vector<1x1x4x128xbf16> to vector<4x128xbf16>
    %cst_76 = arith.constant dense<0.000000e+00> : vector<128x128xf32>
    %82 = tpu.matmul %79, %81, %cst_76 {dimension_numbers = #tpu.dot_dimension_numbers<[1], [0], [0], [1], [0, 0, 1, 1], [], []>} : vector<128x4xbf16>, vector<4x128xbf16>, vector<128x128xf32> -> vector<128x128xf32>
    %83 = arith.addf %74, %82 : vector<128x128xf32>
    %c126_i32 = arith.constant 126 : i32
    %84 = tpu.dynamic_rotate %83 by %c126_i32 dim 0 : vector<128x128xf32>, i32 -> vector<128x128xf32>
    %85 = arith.addf %57, %84 : vector<128x128xf32>
    %86 = vector.broadcast %2 : vector<1x128xf32> to vector<128x128xf32>
    %87 = arith.addf %85, %86 : vector<128x128xf32>
    %88 = arith.truncf %87 : vector<128x128xf32> to vector<128x128xbf16>
    %c0_77 = arith.constant 0 : index
    %c0_78 = arith.constant 0 : index
    %c0_79 = arith.constant 0 : index
    %89 = vector.load %arg5[%c0_77, %c0_78, %c0_79] : memref<1x256x128xbf16, #tpu.memory_space<vmem>>, vector<1x128x128xbf16>
    %90 = vector.shape_cast %89 : vector<1x128x128xbf16> to vector<128x128xbf16>
    %91 = vector.shape_cast %88 : vector<128x128xbf16> to vector<1x128x128xbf16>
    tpu.vector_store %arg5[%c0_77, %c0_78, %c0_79], %91 {strides = array<i32>} : memref<1x256x128xbf16, #tpu.memory_space<vmem>>, vector<1x128x128xbf16>,
    %c4_i32 = arith.constant 4 : i32
    %92 = arith.addi %1, %c4_i32 : i32
    %c0_i32_80 = arith.constant 0 : i32
    %93 = arith.addi %92, %c0_i32_80 : i32
    %c0_81 = arith.constant 0 : index
    %94 = arith.index_cast %93 : i32 to index
    %c0_82 = arith.constant 0 : index
    %c0_83 = arith.constant 0 : index
    %95 = vector.load %arg2[%c0_81, %94, %c0_82, %c0_83] : memref<1x18x32x4xbf16, #tpu.memory_space<vmem>>, vector<1x4x32x4xbf16>
    %96 = vector.shape_cast %95 : vector<1x4x32x4xbf16> to vector<4x32x4xbf16>
    %97 = vector.shape_cast %96 : vector<4x32x4xbf16> to vector<128x4xbf16>
    %c0_84 = arith.constant 0 : index
    %c0_85 = arith.constant 0 : index
    %c0_86 = arith.constant 0 : index
    %c0_87 = arith.constant 0 : index
    %98 = vector.load %arg3[%c0_84, %c0_85, %c0_86, %c0_87] : memref<3x3x4x128xbf16, #tpu.memory_space<vmem>>, vector<1x1x4x128xbf16>
    %99 = vector.shape_cast %98 : vector<1x1x4x128xbf16> to vector<4x128xbf16>
    %cst_88 = arith.constant dense<0.000000e+00> : vector<128x128xf32>
    %100 = tpu.matmul %97, %99, %cst_88 {dimension_numbers = #tpu.dot_dimension_numbers<[1], [0], [0], [1], [0, 0, 1, 1], [], []>} : vector<128x4xbf16>, vector<4x128xbf16>, vector<128x128xf32> -> vector<128x128xf32>
    %c1_i32_89 = arith.constant 1 : i32
    %101 = arith.addi %92, %c1_i32_89 : i32
    %c0_90 = arith.constant 0 : index
    %102 = arith.index_cast %101 : i32 to index
    %c0_91 = arith.constant 0 : index
    %c0_92 = arith.constant 0 : index
    %103 = vector.load %arg2[%c0_90, %102, %c0_91, %c0_92] : memref<1x18x32x4xbf16, #tpu.memory_space<vmem>>, vector<1x4x32x4xbf16>
    %104 = vector.shape_cast %103 : vector<1x4x32x4xbf16> to vector<4x32x4xbf16>
    %105 = vector.shape_cast %104 : vector<4x32x4xbf16> to vector<128x4xbf16>
    %c1_93 = arith.constant 1 : index
    %c0_94 = arith.constant 0 : index
    %c0_95 = arith.constant 0 : index
    %c0_96 = arith.constant 0 : index
    %106 = vector.load %arg3[%c1_93, %c0_94, %c0_95, %c0_96] : memref<3x3x4x128xbf16, #tpu.memory_space<vmem>>, vector<1x1x4x128xbf16>
    %107 = vector.shape_cast %106 : vector<1x1x4x128xbf16> to vector<4x128xbf16>
    %cst_97 = arith.constant dense<0.000000e+00> : vector<128x128xf32>
    %108 = tpu.matmul %105, %107, %cst_97 {dimension_numbers = #tpu.dot_dimension_numbers<[1], [0], [0], [1], [0, 0, 1, 1], [], []>} : vector<128x4xbf16>, vector<4x128xbf16>, vector<128x128xf32> -> vector<128x128xf32>
    %109 = arith.addf %100, %108 : vector<128x128xf32>
    %c2_i32_98 = arith.constant 2 : i32
    %110 = arith.addi %92, %c2_i32_98 : i32
    %c0_99 = arith.constant 0 : index
    %111 = arith.index_cast %110 : i32 to index
    %c0_100 = arith.constant 0 : index
    %c0_101 = arith.constant 0 : index
    %112 = vector.load %arg2[%c0_99, %111, %c0_100, %c0_101] : memref<1x18x32x4xbf16, #tpu.memory_space<vmem>>, vector<1x4x32x4xbf16>
    %113 = vector.shape_cast %112 : vector<1x4x32x4xbf16> to vector<4x32x4xbf16>
    %114 = vector.shape_cast %113 : vector<4x32x4xbf16> to vector<128x4xbf16>
    %c2_102 = arith.constant 2 : index
    %c0_103 = arith.constant 0 : index
    %c0_104 = arith.constant 0 : index
    %c0_105 = arith.constant 0 : index
    %115 = vector.load %arg3[%c2_102, %c0_103, %c0_104, %c0_105] : memref<3x3x4x128xbf16, #tpu.memory_space<vmem>>, vector<1x1x4x128xbf16>
    %116 = vector.shape_cast %115 : vector<1x1x4x128xbf16> to vector<4x128xbf16>
    %cst_106 = arith.constant dense<0.000000e+00> : vector<128x128xf32>
    %117 = tpu.matmul %114, %116, %cst_106 {dimension_numbers = #tpu.dot_dimension_numbers<[1], [0], [0], [1], [0, 0, 1, 1], [], []>} : vector<128x4xbf16>, vector<4x128xbf16>, vector<128x128xf32> -> vector<128x128xf32>
    %118 = arith.addf %109, %117 : vector<128x128xf32>
    %c0_i32_107 = arith.constant 0 : i32
    %119 = arith.addi %92, %c0_i32_107 : i32
    %c0_108 = arith.constant 0 : index
    %120 = arith.index_cast %119 : i32 to index
    %c0_109 = arith.constant 0 : index
    %c0_110 = arith.constant 0 : index
    %121 = vector.load %arg2[%c0_108, %120, %c0_109, %c0_110] : memref<1x18x32x4xbf16, #tpu.memory_space<vmem>>, vector<1x4x32x4xbf16>
    %122 = vector.shape_cast %121 : vector<1x4x32x4xbf16> to vector<4x32x4xbf16>
    %123 = vector.shape_cast %122 : vector<4x32x4xbf16> to vector<128x4xbf16>
    %c0_111 = arith.constant 0 : index
    %c1_112 = arith.constant 1 : index
    %c0_113 = arith.constant 0 : index
    %c0_114 = arith.constant 0 : index
    %124 = vector.load %arg3[%c0_111, %c1_112, %c0_113, %c0_114] : memref<3x3x4x128xbf16, #tpu.memory_space<vmem>>, vector<1x1x4x128xbf16>
    %125 = vector.shape_cast %124 : vector<1x1x4x128xbf16> to vector<4x128xbf16>
    %cst_115 = arith.constant dense<0.000000e+00> : vector<128x128xf32>
    %126 = tpu.matmul %123, %125, %cst_115 {dimension_numbers = #tpu.dot_dimension_numbers<[1], [0], [0], [1], [0, 0, 1, 1], [], []>} : vector<128x4xbf16>, vector<4x128xbf16>, vector<128x128xf32> -> vector<128x128xf32>
    %c1_i32_116 = arith.constant 1 : i32
    %127 = arith.addi %92, %c1_i32_116 : i32
    %c0_117 = arith.constant 0 : index
    %128 = arith.index_cast %127 : i32 to index
    %c0_118 = arith.constant 0 : index
    %c0_119 = arith.constant 0 : index
    %129 = vector.load %arg2[%c0_117, %128, %c0_118, %c0_119] : memref<1x18x32x4xbf16, #tpu.memory_space<vmem>>, vector<1x4x32x4xbf16>
    %130 = vector.shape_cast %129 : vector<1x4x32x4xbf16> to vector<4x32x4xbf16>
    %131 = vector.shape_cast %130 : vector<4x32x4xbf16> to vector<128x4xbf16>
    %c1_120 = arith.constant 1 : index
    %c1_121 = arith.constant 1 : index
    %c0_122 = arith.constant 0 : index
    %c0_123 = arith.constant 0 : index
    %132 = vector.load %arg3[%c1_120, %c1_121, %c0_122, %c0_123] : memref<3x3x4x128xbf16, #tpu.memory_space<vmem>>, vector<1x1x4x128xbf16>
    %133 = vector.shape_cast %132 : vector<1x1x4x128xbf16> to vector<4x128xbf16>
    %cst_124 = arith.constant dense<0.000000e+00> : vector<128x128xf32>
    %134 = tpu.matmul %131, %133, %cst_124 {dimension_numbers = #tpu.dot_dimension_numbers<[1], [0], [0], [1], [0, 0, 1, 1], [], []>} : vector<128x4xbf16>, vector<4x128xbf16>, vector<128x128xf32> -> vector<128x128xf32>
    %135 = arith.addf %126, %134 : vector<128x128xf32>
    %c2_i32_125 = arith.constant 2 : i32
    %136 = arith.addi %92, %c2_i32_125 : i32
    %c0_126 = arith.constant 0 : index
    %137 = arith.index_cast %136 : i32 to index
    %c0_127 = arith.constant 0 : index
    %c0_128 = arith.constant 0 : index
    %138 = vector.load %arg2[%c0_126, %137, %c0_127, %c0_128] : memref<1x18x32x4xbf16, #tpu.memory_space<vmem>>, vector<1x4x32x4xbf16>
    %139 = vector.shape_cast %138 : vector<1x4x32x4xbf16> to vector<4x32x4xbf16>
    %140 = vector.shape_cast %139 : vector<4x32x4xbf16> to vector<128x4xbf16>
    %c2_129 = arith.constant 2 : index
    %c1_130 = arith.constant 1 : index
    %c0_131 = arith.constant 0 : index
    %c0_132 = arith.constant 0 : index
    %141 = vector.load %arg3[%c2_129, %c1_130, %c0_131, %c0_132] : memref<3x3x4x128xbf16, #tpu.memory_space<vmem>>, vector<1x1x4x128xbf16>
    %142 = vector.shape_cast %141 : vector<1x1x4x128xbf16> to vector<4x128xbf16>
    %cst_133 = arith.constant dense<0.000000e+00> : vector<128x128xf32>
    %143 = tpu.matmul %140, %142, %cst_133 {dimension_numbers = #tpu.dot_dimension_numbers<[1], [0], [0], [1], [0, 0, 1, 1], [], []>} : vector<128x4xbf16>, vector<4x128xbf16>, vector<128x128xf32> -> vector<128x128xf32>
    %144 = arith.addf %135, %143 : vector<128x128xf32>
    %c127_i32_134 = arith.constant 127 : i32
    %145 = tpu.dynamic_rotate %144 by %c127_i32_134 dim 0 : vector<128x128xf32>, i32 -> vector<128x128xf32>
    %146 = arith.addf %118, %145 : vector<128x128xf32>
    %c0_i32_135 = arith.constant 0 : i32
    %147 = arith.addi %92, %c0_i32_135 : i32
    %c0_136 = arith.constant 0 : index
    %148 = arith.index_cast %147 : i32 to index
    %c0_137 = arith.constant 0 : index
    %c0_138 = arith.constant 0 : index
    %149 = vector.load %arg2[%c0_136, %148, %c0_137, %c0_138] : memref<1x18x32x4xbf16, #tpu.memory_space<vmem>>, vector<1x4x32x4xbf16>
    %150 = vector.shape_cast %149 : vector<1x4x32x4xbf16> to vector<4x32x4xbf16>
    %151 = vector.shape_cast %150 : vector<4x32x4xbf16> to vector<128x4xbf16>
    %c0_139 = arith.constant 0 : index
    %c2_140 = arith.constant 2 : index
    %c0_141 = arith.constant 0 : index
    %c0_142 = arith.constant 0 : index
    %152 = vector.load %arg3[%c0_139, %c2_140, %c0_141, %c0_142] : memref<3x3x4x128xbf16, #tpu.memory_space<vmem>>, vector<1x1x4x128xbf16>
    %153 = vector.shape_cast %152 : vector<1x1x4x128xbf16> to vector<4x128xbf16>
    %cst_143 = arith.constant dense<0.000000e+00> : vector<128x128xf32>
    %154 = tpu.matmul %151, %153, %cst_143 {dimension_numbers = #tpu.dot_dimension_numbers<[1], [0], [0], [1], [0, 0, 1, 1], [], []>} : vector<128x4xbf16>, vector<4x128xbf16>, vector<128x128xf32> -> vector<128x128xf32>
    %c1_i32_144 = arith.constant 1 : i32
    %155 = arith.addi %92, %c1_i32_144 : i32
    %c0_145 = arith.constant 0 : index
    %156 = arith.index_cast %155 : i32 to index
    %c0_146 = arith.constant 0 : index
    %c0_147 = arith.constant 0 : index
    %157 = vector.load %arg2[%c0_145, %156, %c0_146, %c0_147] : memref<1x18x32x4xbf16, #tpu.memory_space<vmem>>, vector<1x4x32x4xbf16>
    %158 = vector.shape_cast %157 : vector<1x4x32x4xbf16> to vector<4x32x4xbf16>
    %159 = vector.shape_cast %158 : vector<4x32x4xbf16> to vector<128x4xbf16>
    %c1_148 = arith.constant 1 : index
    %c2_149 = arith.constant 2 : index
    %c0_150 = arith.constant 0 : index
    %c0_151 = arith.constant 0 : index
    %160 = vector.load %arg3[%c1_148, %c2_149, %c0_150, %c0_151] : memref<3x3x4x128xbf16, #tpu.memory_space<vmem>>, vector<1x1x4x128xbf16>
    %161 = vector.shape_cast %160 : vector<1x1x4x128xbf16> to vector<4x128xbf16>
    %cst_152 = arith.constant dense<0.000000e+00> : vector<128x128xf32>
    %162 = tpu.matmul %159, %161, %cst_152 {dimension_numbers = #tpu.dot_dimension_numbers<[1], [0], [0], [1], [0, 0, 1, 1], [], []>} : vector<128x4xbf16>, vector<4x128xbf16>, vector<128x128xf32> -> vector<128x128xf32>
    %163 = arith.addf %154, %162 : vector<128x128xf32>
    %c2_i32_153 = arith.constant 2 : i32
    %164 = arith.addi %92, %c2_i32_153 : i32
    %c0_154 = arith.constant 0 : index
    %165 = arith.index_cast %164 : i32 to index
    %c0_155 = arith.constant 0 : index
    %c0_156 = arith.constant 0 : index
    %166 = vector.load %arg2[%c0_154, %165, %c0_155, %c0_156] : memref<1x18x32x4xbf16, #tpu.memory_space<vmem>>, vector<1x4x32x4xbf16>
    %167 = vector.shape_cast %166 : vector<1x4x32x4xbf16> to vector<4x32x4xbf16>
    %168 = vector.shape_cast %167 : vector<4x32x4xbf16> to vector<128x4xbf16>
    %c2_157 = arith.constant 2 : index
    %c2_158 = arith.constant 2 : index
    %c0_159 = arith.constant 0 : index
    %c0_160 = arith.constant 0 : index
    %169 = vector.load %arg3[%c2_157, %c2_158, %c0_159, %c0_160] : memref<3x3x4x128xbf16, #tpu.memory_space<vmem>>, vector<1x1x4x128xbf16>
    %170 = vector.shape_cast %169 : vector<1x1x4x128xbf16> to vector<4x128xbf16>
    %cst_161 = arith.constant dense<0.000000e+00> : vector<128x128xf32>
    %171 = tpu.matmul %168, %170, %cst_161 {dimension_numbers = #tpu.dot_dimension_numbers<[1], [0], [0], [1], [0, 0, 1, 1], [], []>} : vector<128x4xbf16>, vector<4x128xbf16>, vector<128x128xf32> -> vector<128x128xf32>
    %172 = arith.addf %163, %171 : vector<128x128xf32>
    %c126_i32_162 = arith.constant 126 : i32
    %173 = tpu.dynamic_rotate %172 by %c126_i32_162 dim 0 : vector<128x128xf32>, i32 -> vector<128x128xf32>
    %174 = arith.addf %146, %173 : vector<128x128xf32>
    %175 = vector.broadcast %2 : vector<1x128xf32> to vector<128x128xf32>
    %176 = arith.addf %174, %175 : vector<128x128xf32>
    %177 = arith.truncf %176 : vector<128x128xf32> to vector<128x128xbf16>
    %c0_163 = arith.constant 0 : index
    %c128 = arith.constant 128 : index
    %c0_164 = arith.constant 0 : index
    %178 = vector.load %arg5[%c0_163, %c128, %c0_164] : memref<1x256x128xbf16, #tpu.memory_space<vmem>>, vector<1x128x128xbf16>
    %179 = vector.shape_cast %178 : vector<1x128x128xbf16> to vector<128x128xbf16>
    %180 = vector.shape_cast %177 : vector<128x128xbf16> to vector<1x128x128xbf16>
    tpu.vector_store %arg5[%c0_163, %c128, %c0_164], %180 {strides = array<i32>} : memref<1x256x128xbf16, #tpu.memory_space<vmem>>, vector<1x128x128xbf16>,
    return
  }
  func.func @transform_0(%arg0: i32, %arg1: i32) -> (i32, i32, i32, i32) {
    %c0_i32 = arith.constant 0 : i32
    %c0_i32_0 = arith.constant 0 : i32
    %c0_i32_1 = arith.constant 0 : i32
    %c0_i32_2 = arith.constant 0 : i32
    return %arg0, %c0_i32, %c0_i32_0, %c0_i32_1 : i32, i32, i32, i32
  }
  func.func @transform_1(%arg0: i32, %arg1: i32) -> (i32, i32, i32, i32) {
    %c0_i32 = arith.constant 0 : i32
    %c0_i32_0 = arith.constant 0 : i32
    %c0_i32_1 = arith.constant 0 : i32
    %c0_i32_2 = arith.constant 0 : i32
    %c0_i32_3 = arith.constant 0 : i32
    return %c0_i32, %c0_i32_0, %c0_i32_1, %c0_i32_2 : i32, i32, i32, i32
  }
  func.func @transform_2(%arg0: i32, %arg1: i32) -> (i32, i32) {
    %c0_i32 = arith.constant 0 : i32
    %c0_i32_0 = arith.constant 0 : i32
    %c0_i32_1 = arith.constant 0 : i32
    return %c0_i32, %c0_i32_0 : i32, i32
  }
  func.func @transform_3(%arg0: i32, %arg1: i32) -> (i32, i32, i32) {
    %c0_i32 = arith.constant 0 : i32
    %c0_i32_0 = arith.constant 0 : i32
    return %arg0, %arg1, %c0_i32 : i32, i32, i32
  }
}

</mosaic_0001>

<bundles_post_ra>
// kernel: prediction_head_forward.1
= control target key start
LH: loop header
LB: loop body
LE: loop exit
PB: predicated region body
PF: predicated region fallthrough
CT: control target
= control target key end

     0   :  { %s4448_s12 = smov 0   ;;  %s4450_s13 = smov 0   ;;  %s5342_s0 = inlined_call_operand.vmem [shape: bf16[2,18,32,4], index: 0, kind: input, shape index: {}]   ;;  %s5343_s1 = inlined_call_operand.vmem [shape: bf16[3,3,4,128], index: 1, kind: input, shape index: {}]   ;;  %s5344_s2 = inlined_call_operand.vmem [shape: f32[1,128], index: 2, kind: input, shape index: {}]   ;;  %s5345_s3 = inlined_call_operand.vmem [shape: bf16[2,512,128], index: 3, kind: output, shape index: {}]  }
   0x1   :  { %s4452_s14 = smov 0   ;;  %s4454_s15 = smov 0  }
   0x2   :  { %s4456_s16 = smov 0  }
   0x3 LB: > { %s22_s17 = sadd.s32 1, %s4418_s14  ;;  %s25_s18 = sadd.s32 1, %s4422_s15  ;;  %s4426_s16 = sphi %s4456_s16, %s13_s16   ;;  %s4422_s15 = sphi %s4454_s15, %s5349_s15   ;;  %s4418_s14 = sphi %s4452_s14, %s5348_s14   ;;  %s4414_s13 = sphi %s4450_s13, %s5347_s13   ;;  %s4410_s12 = sphi %s4448_s12, %s5346_s12  }
   0x4   : > { %p23_p0 = scmp.ge.s32.totalorder %s22_s17, 2  ;;  %p3128_p1 = scmp.ge.s32.totalorder %s4426_s16, 1 }
   0x5   : > { %p151_p2 = scmp.lt.s32.totalorder %s4426_s16, 5 }
   0x6   : > { %s5351_s17 = smov (%p23_p0, %s22_s17), 0  ;;  %s5353_s18 = smov (!%p23_p0, %s25_s18), %s4422_s15 }
   0x7   : > { %p152_p3 = pnand %p3128_p1, %p151_p2  ;;  %p27_p4 = scmp.ge.s32.totalorder %s5353_s18, 2 }
   0x8   : > { %v3154_v0 = vld [vmem:[%s5343_s1 + $0x6] sm:$0x3] (!%p152_p3)  ;;  %vm304_vm0 = vcmask (!%p152_p3), 1041408   ;;  %v3223_v1 = vld [vmem:[%s5343_s1 + $0x8] sm:$0x3] (!%p152_p3)  ;;  %p179_p5 = scmp.lt.s32.totalorder (!%p152_p3), %s4414_s13, 1 }
   0x9   : > { %s5355_s18 = smov (%p27_p4, %s5353_s18), 0  ;;  %155 = sbr.rel (%p152_p3) target bundleno = 531 (0x213), region = 32 }
   0xa   : > { %4281 = vmatprep.subr.msk.bf16.mxu0 (!%p152_p3), %vm304_vm0, %v3154_v0  ;;  %v306_v2 = vsel (!%p152_p3), %vm304_vm0, %v3154_v0, 0  ;;  %4284 = vmatprep.subr.msk.bf16.mxu1 (!%p152_p3), %vm304_vm0, %v3223_v1  ;;  %v776_v3 = vsel (!%p152_p3), %vm304_vm0, %v3223_v1, 0  ;;  %v216_v4 = vld [vmem:[%s5343_s1] sm:$0x3] (!%p152_p3)  ;;  %v3222_v5 = vld [vmem:[%s5343_s1 + $0x2] sm:$0x3] (!%p152_p3) }
   0xb   : > { %3766 = vmatpush3.bf16.msra.mxu0 (!%p152_p3), %v306_v2  ;;  %3820 = vmatpush3.bf16.msra.mxu1 (!%p152_p3), %v776_v3  ;;  %s3470_s28 = sshll.u32 (!%p152_p3), %s4410_s12, 7  ;;  %vm279_vm1 = vcmask (!%p152_p3), 31744   ;;  %v470_v7 = vsel (!%p152_p3), %vm304_vm0, %v216_v4, 0  ;;  %v876_v9 = vsel (!%p152_p3), %vm304_vm0, %v3222_v5, 0  ;;  %v3205_v10 = vld [vmem:[%s5343_s1 + $0xc] sm:$0x3] (!%p152_p3) }
   0xc   : > { %4282 = vmatprep.subr.msk.bf16.mxu0 (!%p152_p3), %vm304_vm0, %v216_v4  ;;  %4285 = vmatprep.subr.msk.bf16.mxu1 (!%p152_p3), %vm304_vm0, %v3222_v5  ;;  %v3240_v12 = vld [vmem:[%s5343_s1 + $0xe] sm:$0x3] (!%p152_p3)  ;;  %v656_v20 = vsel (!%p152_p3), %vm304_vm0, %v3205_v10, 0  ;;  %v3250_v23 = vld [vmem:[%s5343_s1 + $0xa] sm:$0x3] (!%p152_p3)  ;;  %s3130_s21 = sshll.u32 (!%p152_p3), %s4410_s12, 5 }
   0xd   : > { %v978_v21 = vsel (!%p152_p3), %vm304_vm0, %v3240_v12, 0  ;;  %v3329_v24 = vld [vmem:[%s5343_s1 + $0x6] sm:$0x3] (!%p152_p3)  ;;  %v1149_v32 = vsel (!%p152_p3), %vm304_vm0, %v3250_v23, 0  ;;  %v3249_v35 = vld [vmem:[%s5343_s1 + $0x4] sm:$0x3] (!%p152_p3) }
   0xe   : > { %v1724_v33 = vsel (!%p152_p3), %vm304_vm0, %v3329_v24, 0  ;;  %v1637_v36 = vld [vmem:[%s5343_s1] sm:$0x3] (!%p152_p3)  ;;  %v1249_v44 = vsel (!%p152_p3), %vm304_vm0, %v3249_v35, 0  ;;  %v3267_v47 = vld [vmem:[%s5343_s1 + $0x10] sm:$0x3] (!%p152_p3) }
   0xf   : > { %v1888_v45 = vsel (!%p152_p3), %vm304_vm0, %v1637_v36, 0  ;;  %v3380_v48 = vld [vmem:[%s5343_s1 + $0xc] sm:$0x3] (!%p152_p3)  ;;  %v1351_v56 = vsel (!%p152_p3), %vm304_vm0, %v3267_v47, 0  ;;  %v3398_v59 = vld [vmem:[%s5343_s1 + $0x8] sm:$0x3] (!%p152_p3) }
  0x10   : > { %s5357_s13 = smov (!%p179_p5, %s4414_s13), 1  ;;  %v2073_v57 = vsel %vm304_vm0, %v3380_v48, 0  ;;  %v3425_v60 = vld [vmem:[%s5343_s1 + $0xa] sm:$0x3]  ;;  %v2191_v4 = vsel %vm304_vm0, %v3398_v59, 0  ;;  %p187_p6 = scmp.lt.s32.totalorder %s3130_s21, 63 }
  0x11   : > { %s4299_s27 = smul.u32 288, %s5357_s13  ;;  %v2558_v5 = vsel %vm304_vm0, %v3425_v60, 0  ;;  %s3131_s22 = sshll.u32 %s5357_s13, 6 }
  0x12   : > { %s5359_s21 = smov (!%p187_p6, %s3130_s21), 63 }
  0x13   : > { %s183_s4 = scalar_lea.vmem %s5342_s0, %s4299_s27  ;;  %s190_s12 = sadd.s32 %s3131_s22, %s5359_s21 }
  0x14   : > { %s4505_s5 = scalar_lea.vmem %s183_s4, %s3470_s28  ;;  %s3132_s13 = sshll.u32 %s190_s12, 2 }
  0x15   : > { %v4508_v6 = vld [vmem:[%s4505_s5 + $0x10] sm:$0xff]   ;;  %v4512_v8 = vld [vmem:[%s4505_s5 + $0x18] sm:$0xff]   ;;  %v4523_v11 = vld [vmem:[%s4505_s5 + $0x20] sm:$0xff]   ;;  %s5124_s27 = scalar_lea.vmem %s5345_s3, %s3132_s13 }
  0x16   : > { %3767 = vmatprep.mubr.msk.bf16.mxu0 %vm279_vm1, %v4508_v6  ;;  %3821 = vmatprep.mubr.msk.bf16.mxu1 %vm279_vm1, %v4508_v6  ;;  %v4539_v13 = vld [vmem:[%s4505_s5 + $0x28] sm:$0xff]   ;;  %v4542_v14 = vld [vmem:[%s4505_s5 + $0x30] sm:$0xff]   ;;  %v4553_v15 = vld [vmem:[%s4505_s5 + $0x38] sm:$0xff]  }
  0x17   : > { %3768 = vmatmul.mubr.msk.bf16.vlgmr.msra.gmra.mrb[0].mxu0 %vm279_vm1, %v4512_v8  ;;  %3822 = vmatmul.mubr.msk.bf16.vlgmr.msra.gmra.mrb[0].mxu1 %vm279_vm1, %v4512_v8  ;;  %v4556_v16 = vld [vmem:[%s4505_s5 + $0x40] sm:$0xff]   ;;  %v4567_v17 = vld [vmem:[%s4505_s5 + $0x48] sm:$0xff]   ;;  %v4586_v22 = vld [vmem:[%s4505_s5 + $0x10] sm:$0xff]  }
  0x18   : > { %3784 = vmatpush3.bf16.msra.mxu0 %v470_v7  ;;  %3838 = vmatpush3.bf16.msra.mxu1 %v876_v9  ;;  %v4570_v18 = vld [vmem:[%s4505_s5] sm:$0xff]   ;;  %v4581_v19 = vld [vmem:[%s4505_s5 + $0x8] sm:$0xff]   ;;  %v4605_v25 = vld [vmem:[%s4505_s5 + $0x18] sm:$0xff]  }
  0x19   : > { %3771 = vmatprep.mubr.msk.bf16.mxu0 %vm279_vm1, %v4523_v11  ;;  %3825 = vmatprep.mubr.msk.bf16.mxu1 %vm279_vm1, %v4523_v11  ;;  %v4608_v26 = vld [vmem:[%s4505_s5 + $0x20] sm:$0xff]   ;;  %v4619_v27 = vld [vmem:[%s4505_s5 + $0x28] sm:$0xff]   ;;  %v4622_v28 = vld [vmem:[%s4505_s5 + $0x30] sm:$0xff]  }
  0x1a   : > { %4283 = vmatprep.subr.msk.bf16.mxu0 %vm304_vm0, %v3205_v10  ;;  %4286 = vmatprep.subr.msk.bf16.mxu1 %vm304_vm0, %v3240_v12  ;;  %v4633_v29 = vld [vmem:[%s4505_s5 + $0x38] sm:$0xff]   ;;  %v4636_v30 = vld [vmem:[%s4505_s5 + $0x20] sm:$0xff]   ;;  %v4647_v31 = vld [vmem:[%s4505_s5 + $0x28] sm:$0xff]  }
  0x1b   : > { %v4652_v34 = vld [vmem:[%s4505_s5 + $0x30] sm:$0xff]   ;;  %v4671_v37 = vld [vmem:[%s4505_s5 + $0x38] sm:$0xff]   ;;  %v4674_v38 = vld [vmem:[%s4505_s5 + $0x40] sm:$0xff]  }
  0x1c   : > { %v4685_v39 = vld [vmem:[%s4505_s5 + $0x48] sm:$0xff]   ;;  %v4688_v40 = vld [vmem:[%s4505_s5 + $0x50] sm:$0xff]   ;;  %v4699_v41 = vld [vmem:[%s4505_s5 + $0x58] sm:$0xff]  }
  0x1d   : > { %v4702_v42 = vld [vmem:[%s4505_s5 + $0x50] sm:$0xff]   ;;  %v4713_v43 = vld [vmem:[%s4505_s5 + $0x58] sm:$0xff]   ;;  %v4718_v46 = vld [vmem:[%s4505_s5 + $0x60] sm:$0xff]  }
  0x1e   : > { %v4737_v49 = vld [vmem:[%s4505_s5 + $0x68] sm:$0xff]   ;;  %v4740_v50 = vld [vmem:[%s4505_s5 + $0x70] sm:$0xff]   ;;  %v4751_v51 = vld [vmem:[%s4505_s5 + $0x78] sm:$0xff]  }
  0x1f   : > { %3772 = vmatmul.mubr.msk.bf16.gmra.mrb[4].mxu0 %vm279_vm1, %v4539_v13  ;;  %3826 = vmatmul.mubr.msk.bf16.gmra.mrb[4].mxu1 %vm279_vm1, %v4539_v13  ;;  %v4754_v52 = vld [vmem:[%s4505_s5 + $0x80] sm:$0xff]   ;;  %v4765_v53 = vld [vmem:[%s4505_s5 + $0x88] sm:$0xff]   ;;  %v4784_v58 = vld [vmem:[%s4505_s5 + $0x50] sm:$0xff]  }
  0x20   : > { %3775 = vmatprep.mubr.msk.bf16.mxu0 %vm279_vm1, %v4542_v14  ;;  %3829 = vmatprep.mubr.msk.bf16.mxu1 %vm279_vm1, %v4542_v14  ;;  %v4768_v54 = vld [vmem:[%s4505_s5 + $0x40] sm:$0xff]   ;;  %v4779_v55 = vld [vmem:[%s4505_s5 + $0x48] sm:$0xff]   ;;  %v4803_v61 = vld [vmem:[%s4505_s5 + $0x58] sm:$0xff]  }
  0x21   : > { %v4806_v62 = vld [vmem:[%s4505_s5 + $0x60] sm:$0xff]   ;;  %v4817_v63 = vld [vmem:[%s4505_s5 + $0x68] sm:$0xff]   ;;  %v4820_v0 = vld [vmem:[%s4505_s5 + $0x70] sm:$0xff]  }
  0x22   : > { %v4831_v1 = vld [vmem:[%s4505_s5 + $0x78] sm:$0xff]   ;;  %v4834_v2 = vld [vmem:[%s4505_s5 + $0x60] sm:$0xff]   ;;  %v4845_v3 = vld [vmem:[%s4505_s5 + $0x68] sm:$0xff]  }
  0x23   : > { %v3397_v7 = vld [vmem:[%s5343_s1 + $0x2] sm:$0x3]  ;;  %v4869_v9 = vld [vmem:[%s4505_s5 + $0x78] sm:$0xff]   ;;  %v4886_v12 = vld [vmem:[%s4505_s5 + $0x90] sm:$0xff]  }
  0x24   : > { %v4872_v10 = vld [vmem:[%s4505_s5 + $0x80] sm:$0xff]  }
  0x27   : > { %3776 = vmatmul.mubr.msk.bf16.gmra.mrb[8].mxu0 %vm279_vm1, %v4553_v15  ;;  %3830 = vmatmul.mubr.msk.bf16.gmra.mrb[8].mxu1 %vm279_vm1, %v4553_v15 }
  0x28   : > { %3779 = vmatprep.mubr.msk.bf16.mxu0 %vm279_vm1, %v4556_v16  ;;  %3833 = vmatprep.mubr.msk.bf16.mxu1 %vm279_vm1, %v4556_v16 }
  0x2f   : > { %3780 = vmatmul.mubr.msk.bf16.gmra.mrb[12].mxu0 %vm279_vm1, %v4567_v17  ;;  %3834 = vmatmul.mubr.msk.bf16.gmra.mrb[12].mxu1 %vm279_vm1, %v4567_v17 }
  0x30   : > { %3785 = vmatprep.mubr.msk.bf16.mxu0 %vm279_vm1, %v4570_v18  ;;  %3839 = vmatprep.mubr.msk.bf16.mxu1 %vm279_vm1, %v4570_v18 }
  0x37   : > { %3786 = vmatmul.mubr.msk.bf16.vlgmr.msra.gmra.mrb[0].mxu0 %vm279_vm1, %v4581_v19  ;;  %3840 = vmatmul.mubr.msk.bf16.vlgmr.msra.gmra.mrb[0].mxu1 %vm279_vm1, %v4581_v19 }
  0x38   : > { %3802 = vmatpush3.bf16.msra.mxu0 %v656_v20  ;;  %3856 = vmatpush3.bf16.msra.mxu1 %v978_v21  ;;  %v1109_v20 = vlaneseq }
  0x39   : > { %3789 = vmatprep.mubr.msk.bf16.mxu0 %vm279_vm1, %v4586_v22  ;;  %3843 = vmatprep.mubr.msk.bf16.mxu1 %vm279_vm1, %v4586_v22 }
  0x3a   : > { %4287 = vmatprep.subr.msk.bf16.mxu0 %vm304_vm0, %v3250_v23  ;;  %4290 = vmatprep.subr.msk.bf16.mxu1 %vm304_vm0, %v3329_v24  ;;  %v5003_v21 = vshrl.u32 %v1109_v20, 7 }
  0x3c   : > { %vm1111_vm2 = vcmp.lt.s32.totalorder %v5003_v21, 7  ;;  %vm1482_vm3 = vcmp.lt.s32.totalorder %v5003_v21, 6 }
  0x3f   : > { %3790 = vmatmul.mubr.msk.bf16.gmra.mrb[4].mxu0 %vm279_vm1, %v4605_v25  ;;  %3844 = vmatmul.mubr.msk.bf16.gmra.mrb[4].mxu1 %vm279_vm1, %v4605_v25 }
  0x40   : > { %3793 = vmatprep.mubr.msk.bf16.mxu0 %vm279_vm1, %v4608_v26  ;;  %3847 = vmatprep.mubr.msk.bf16.mxu1 %vm279_vm1, %v4608_v26 }
  0x47   : > { %3794 = vmatmul.mubr.msk.bf16.gmra.mrb[8].mxu0 %vm279_vm1, %v4619_v27  ;;  %3848 = vmatmul.mubr.msk.bf16.gmra.mrb[8].mxu1 %vm279_vm1, %v4619_v27 }
  0x48   : > { %3797 = vmatprep.mubr.msk.bf16.mxu0 %vm279_vm1, %v4622_v28  ;;  %3851 = vmatprep.mubr.msk.bf16.mxu1 %vm279_vm1, %v4622_v28 }
  0x4f   : > { %3798 = vmatmul.mubr.msk.bf16.gmra.mrb[12].mxu0 %vm279_vm1, %v4633_v29  ;;  %3852 = vmatmul.mubr.msk.bf16.gmra.mrb[12].mxu1 %vm279_vm1, %v4633_v29 }
  0x50   : > { %3803 = vmatprep.mubr.msk.bf16.mxu0 %vm279_vm1, %v4636_v30  ;;  %3857 = vmatprep.mubr.msk.bf16.mxu1 %vm279_vm1, %v4636_v30 }
  0x57   : > { %3804 = vmatmul.mubr.msk.bf16.vlgmr.msra.gmra.mrb[0].mxu0 %vm279_vm1, %v4647_v31  ;;  %3858 = vmatmul.mubr.msk.bf16.vlgmr.msra.gmra.mrb[0].mxu1 %vm279_vm1, %v4647_v31 }
  0x58   : > { %3874 = vmatpush3.bf16.msra.mxu0 %v1149_v32  ;;  %3928 = vmatpush3.bf16.msra.mxu1 %v1724_v33 }
  0x59   : > { %3807 = vmatprep.mubr.msk.bf16.mxu0 %vm279_vm1, %v4652_v34  ;;  %3861 = vmatprep.mubr.msk.bf16.mxu1 %vm279_vm1, %v4652_v34 }
  0x5a   : > { %4288 = vmatprep.subr.msk.bf16.mxu0 %vm304_vm0, %v3249_v35  ;;  %4291 = vmatprep.subr.msk.bf16.mxu1 %vm304_vm0, %v1637_v36 }
  0x5f   : > { %3808 = vmatmul.mubr.msk.bf16.gmra.mrb[4].mxu0 %vm279_vm1, %v4671_v37  ;;  %3862 = vmatmul.mubr.msk.bf16.gmra.mrb[4].mxu1 %vm279_vm1, %v4671_v37 }
  0x60   : > { %3811 = vmatprep.mubr.msk.bf16.mxu0 %vm279_vm1, %v4674_v38  ;;  %3865 = vmatprep.mubr.msk.bf16.mxu1 %vm279_vm1, %v4674_v38 }
  0x67   : > { %3812 = vmatmul.mubr.msk.bf16.gmra.mrb[8].mxu0 %vm279_vm1, %v4685_v39  ;;  %3866 = vmatmul.mubr.msk.bf16.gmra.mrb[8].mxu1 %vm279_vm1, %v4685_v39 }
  0x68   : > { %3815 = vmatprep.mubr.msk.bf16.mxu0 %vm279_vm1, %v4688_v40  ;;  %3869 = vmatprep.mubr.msk.bf16.mxu1 %vm279_vm1, %v4688_v40 }
  0x6f   : > { %3816 = vmatmul.mubr.msk.bf16.gmra.mrb[12].mxu0 %vm279_vm1, %v4699_v41  ;;  %3870 = vmatmul.mubr.msk.bf16.gmra.mrb[12].mxu1 %vm279_vm1, %v4699_v41 }
  0x70   : > { %3875 = vmatprep.mubr.msk.bf16.mxu0 %vm279_vm1, %v4508_v6  ;;  %3929 = vmatprep.mubr.msk.bf16.mxu1 %vm279_vm1, %v4702_v42  ;;  %v4850_v6 = vld [vmem:[%s4505_s5 + $0x70] sm:$0xff]  }
  0x77   : > { %3876 = vmatmul.mubr.msk.bf16.vlgmr.msra.gmra.mrb[16].mxu0 %vm279_vm1, %v4512_v8  ;;  %3930 = vmatmul.mubr.msk.bf16.vlgmr.msra.gmra.mrb[16].mxu1 %vm279_vm1, %v4713_v43  ;;  %v3424_v8 = vld [vmem:[%s5343_s1 + $0x4] sm:$0x3] }
  0x78   : > { %3892 = vmatpush3.bf16.msra.mxu0 %v1249_v44  ;;  %3946 = vmatpush3.bf16.msra.mxu1 %v1888_v45 }
  0x79   : > { %3879 = vmatprep.mubr.msk.bf16.mxu0 %vm279_vm1, %v4523_v11  ;;  %3933 = vmatprep.mubr.msk.bf16.mxu1 %vm279_vm1, %v4718_v46  ;;  %v4883_v11 = vld [vmem:[%s4505_s5 + $0x88] sm:$0xff]  }
  0x7a   : > { %4289 = vmatprep.subr.msk.bf16.mxu0 %vm304_vm0, %v3267_v47  ;;  %4292 = vmatprep.subr.msk.bf16.mxu1 %vm304_vm0, %v3380_v48 }
  0x7f   : > { %3880 = vmatmul.mubr.msk.bf16.gmra.mrb[20].mxu0 %vm279_vm1, %v4539_v13  ;;  %3934 = vmatmul.mubr.msk.bf16.gmra.mrb[20].mxu1 %vm279_vm1, %v4737_v49  ;;  %v4897_v13 = vld [vmem:[%s4505_s5 + $0x98] sm:$0xff]  }
  0x80   : > { %3883 = vmatprep.mubr.msk.bf16.mxu0 %vm279_vm1, %v4542_v14  ;;  %3937 = vmatprep.mubr.msk.bf16.mxu1 %vm279_vm1, %v4740_v50  ;;  %v2291_v14 = vsel %vm304_vm0, %v3397_v7, 0 }
  0x87   : > { %3884 = vmatmul.mubr.msk.bf16.gmra.mrb[24].mxu0 %vm279_vm1, %v4553_v15  ;;  %3938 = vmatmul.mubr.msk.bf16.gmra.mrb[24].mxu1 %vm279_vm1, %v4751_v51  ;;  %v2658_v15 = vsel %vm304_vm0, %v3424_v8, 0 }
  0x88   : > { %3887 = vmatprep.mubr.msk.bf16.mxu0 %vm279_vm1, %v4556_v16  ;;  %3941 = vmatprep.mubr.msk.bf16.mxu1 %vm279_vm1, %v4754_v52  ;;  %v3415_v16 = vld [vmem:[%s5343_s1 + $0xe] sm:$0x3] }
  0x8f   : > { %3888 = vmatmul.mubr.msk.bf16.gmra.mrb[28].mxu0 %vm279_vm1, %v4567_v17  ;;  %3942 = vmatmul.mubr.msk.bf16.gmra.mrb[28].mxu1 %vm279_vm1, %v4765_v53  ;;  %v3442_v17 = vld [vmem:[%s5343_s1 + $0x10] sm:$0x3] }
  0x90   : > { %3893 = vmatprep.mubr.msk.bf16.mxu0 %vm279_vm1, %v4570_v18  ;;  %3947 = vmatprep.mubr.msk.bf16.mxu1 %vm279_vm1, %v4768_v54  ;;  %v2392_v18 = vsel %vm304_vm0, %v3415_v16, 0 }
  0x97   : > { %3894 = vmatmul.mubr.msk.bf16.vlgmr.msra.gmra.mrb[16].mxu0 %vm279_vm1, %v4581_v19  ;;  %3948 = vmatmul.mubr.msk.bf16.vlgmr.msra.gmra.mrb[16].mxu1 %vm279_vm1, %v4779_v55  ;;  %v2759_v19 = vsel %vm304_vm0, %v3442_v17, 0 }
  0x98   : > { %3910 = vmatpush3.bf16.msra.mxu0 %v1351_v56  ;;  %3964 = vmatpush3.bf16.msra.mxu1 %v2073_v57 }
  0x99   : > { %3897 = vmatprep.mubr.msk.bf16.mxu0 %vm279_vm1, %v4586_v22  ;;  %3951 = vmatprep.mubr.msk.bf16.mxu1 %vm279_vm1, %v4784_v58 }
  0x9a   : > { %4293 = vmatprep.subr.msk.bf16.mxu0 %vm304_vm0, %v3398_v59  ;;  %4296 = vmatprep.subr.msk.bf16.mxu1 %vm304_vm0, %v3425_v60 }
  0x9f   : > { %3898 = vmatmul.mubr.msk.bf16.gmra.mrb[20].mxu0 %vm279_vm1, %v4605_v25  ;;  %3952 = vmatmul.mubr.msk.bf16.gmra.mrb[20].mxu1 %vm279_vm1, %v4803_v61 }
  0xa0   : > { %3901 = vmatprep.mubr.msk.bf16.mxu0 %vm279_vm1, %v4608_v26  ;;  %3955 = vmatprep.mubr.msk.bf16.mxu1 %vm279_vm1, %v4806_v62 }
  0xa7   : > { %3902 = vmatmul.mubr.msk.bf16.gmra.mrb[24].mxu0 %vm279_vm1, %v4619_v27  ;;  %3956 = vmatmul.mubr.msk.bf16.gmra.mrb[24].mxu1 %vm279_vm1, %v4817_v63 }
  0xa8   : > { %3905 = vmatprep.mubr.msk.bf16.mxu0 %vm279_vm1, %v4622_v28  ;;  %3959 = vmatprep.mubr.msk.bf16.mxu1 %vm279_vm1, %v4820_v0 }
  0xaf   : > { %3906 = vmatmul.mubr.msk.bf16.gmra.mrb[28].mxu0 %vm279_vm1, %v4633_v29  ;;  %3960 = vmatmul.mubr.msk.bf16.gmra.mrb[28].mxu1 %vm279_vm1, %v4831_v1 }
  0xb0   : > { %3911 = vmatprep.mubr.msk.bf16.mxu0 %vm279_vm1, %v4636_v30  ;;  %3965 = vmatprep.mubr.msk.bf16.mxu1 %vm279_vm1, %v4834_v2 }
  0xb7   : > { %3912 = vmatmul.mubr.msk.bf16.vlgmr.msra.gmra.mrb[16].mxu0 %vm279_vm1, %v4647_v31  ;;  %3966 = vmatmul.mubr.msk.bf16.vlgmr.msra.gmra.mrb[16].mxu1 %vm279_vm1, %v4845_v3 }
  0xb8   : > { %3982 = vmatpush3.bf16.msra.mxu0 %v2191_v4  ;;  %4036 = vmatpush3.bf16.msra.mxu1 %v2558_v5 }
  0xb9   : > { %3915 = vmatprep.mubr.msk.bf16.mxu0 %vm279_vm1, %v4652_v34  ;;  %3969 = vmatprep.mubr.msk.bf16.mxu1 %vm279_vm1, %v4850_v6 }
  0xba   : > { %4294 = vmatprep.subr.msk.bf16.mxu0 %vm304_vm0, %v3397_v7  ;;  %4297 = vmatprep.subr.msk.bf16.mxu1 %vm304_vm0, %v3424_v8 }
  0xbf   : > { %3916 = vmatmul.mubr.msk.bf16.gmra.mrb[20].mxu0 %vm279_vm1, %v4671_v37  ;;  %3970 = vmatmul.mubr.msk.bf16.gmra.mrb[20].mxu1 %vm279_vm1, %v4869_v9 }
  0xc0   : > { %3919 = vmatprep.mubr.msk.bf16.mxu0 %vm279_vm1, %v4674_v38  ;;  %3973 = vmatprep.mubr.msk.bf16.mxu1 %vm279_vm1, %v4872_v10 }
  0xc7   : > { %3920 = vmatmul.mubr.msk.bf16.gmra.mrb[24].mxu0 %vm279_vm1, %v4685_v39  ;;  %3974 = vmatmul.mubr.msk.bf16.gmra.mrb[24].mxu1 %vm279_vm1, %v4883_v11 }
  0xc8   : > { %3923 = vmatprep.mubr.msk.bf16.mxu0 %vm279_vm1, %v4688_v40  ;;  %3977 = vmatprep.mubr.msk.bf16.mxu1 %vm279_vm1, %v4886_v12 }
  0xcf   : > { %3924 = vmatmul.mubr.msk.bf16.gmra.mrb[28].mxu0 %vm279_vm1, %v4699_v41  ;;  %3978 = vmatmul.mubr.msk.bf16.gmra.mrb[28].mxu1 %vm279_vm1, %v4897_v13 }
  0xd0   : > { %3983 = vmatprep.mubr.msk.bf16.mxu0 %vm279_vm1, %v4702_v42  ;;  %4037 = vmatprep.mubr.msk.bf16.mxu1 %vm279_vm1, %v4702_v42 }
  0xd7   : > { %3984 = vmatmul.mubr.msk.bf16.vlgmr.msra.gmra.mrb[32].mxu0 %vm279_vm1, %v4713_v43  ;;  %4038 = vmatmul.mubr.msk.bf16.vlgmr.msra.gmra.mrb[32].mxu1 %vm279_vm1, %v4713_v43 }
  0xd8   : > { %4000 = vmatpush3.bf16.msra.mxu0 %v2291_v14  ;;  %4054 = vmatpush3.bf16.msra.mxu1 %v2658_v15 }
  0xd9   : > { %3987 = vmatprep.mubr.msk.bf16.mxu0 %vm279_vm1, %v4718_v46  ;;  %4041 = vmatprep.mubr.msk.bf16.mxu1 %vm279_vm1, %v4718_v46 }
  0xda   : > { %4295 = vmatprep.subr.msk.bf16.mxu0 %vm304_vm0, %v3415_v16  ;;  %4298 = vmatprep.subr.msk.bf16.mxu1 %vm304_vm0, %v3442_v17 }
  0xdf   : > { %3988 = vmatmul.mubr.msk.bf16.gmra.mrb[36].mxu0 %vm279_vm1, %v4737_v49  ;;  %4042 = vmatmul.mubr.msk.bf16.gmra.mrb[36].mxu1 %vm279_vm1, %v4737_v49 }
  0xe0   : > { %3991 = vmatprep.mubr.msk.bf16.mxu0 %vm279_vm1, %v4740_v50  ;;  %4045 = vmatprep.mubr.msk.bf16.mxu1 %vm279_vm1, %v4740_v50 }
  0xe7   : > { %3992 = vmatmul.mubr.msk.bf16.gmra.mrb[40].mxu0 %vm279_vm1, %v4751_v51  ;;  %4046 = vmatmul.mubr.msk.bf16.gmra.mrb[40].mxu1 %vm279_vm1, %v4751_v51 }
  0xe8   : > { %3995 = vmatprep.mubr.msk.bf16.mxu0 %vm279_vm1, %v4754_v52  ;;  %4049 = vmatprep.mubr.msk.bf16.mxu1 %vm279_vm1, %v4754_v52 }
  0xef   : > { %3996 = vmatmul.mubr.msk.bf16.gmra.mrb[44].mxu0 %vm279_vm1, %v4765_v53  ;;  %4050 = vmatmul.mubr.msk.bf16.gmra.mrb[44].mxu1 %vm279_vm1, %v4765_v53 }
  0xf0   : > { %4001 = vmatprep.mubr.msk.bf16.mxu0 %vm279_vm1, %v4768_v54  ;;  %4055 = vmatprep.mubr.msk.bf16.mxu1 %vm279_vm1, %v4768_v54 }
  0xf7   : > { %4002 = vmatmul.mubr.msk.bf16.vlgmr.msra.gmra.mrb[32].mxu0 %vm279_vm1, %v4779_v55  ;;  %4056 = vmatmul.mubr.msk.bf16.vlgmr.msra.gmra.mrb[32].mxu1 %vm279_vm1, %v4779_v55 }
  0xf8   : > { %4018 = vmatpush3.bf16.msra.mxu0 %v2392_v18  ;;  %4072 = vmatpush3.bf16.msra.mxu1 %v2759_v19 }
  0xf9   : > { %4005 = vmatprep.mubr.msk.bf16.mxu0 %vm279_vm1, %v4784_v58  ;;  %4059 = vmatprep.mubr.msk.bf16.mxu1 %vm279_vm1, %v4784_v58 }
  0xff   : > { %4006 = vmatmul.mubr.msk.bf16.gmra.mrb[36].mxu0 %vm279_vm1, %v4803_v61  ;;  %4060 = vmatmul.mubr.msk.bf16.gmra.mrb[36].mxu1 %vm279_vm1, %v4803_v61 }
 0x100   : > { %4009 = vmatprep.mubr.msk.bf16.mxu0 %vm279_vm1, %v4806_v62  ;;  %4063 = vmatprep.mubr.msk.bf16.mxu1 %vm279_vm1, %v4806_v62 }
 0x107   : > { %4010 = vmatmul.mubr.msk.bf16.gmra.mrb[40].mxu0 %vm279_vm1, %v4817_v63  ;;  %4064 = vmatmul.mubr.msk.bf16.gmra.mrb[40].mxu1 %vm279_vm1, %v4817_v63 }
 0x108   : > { %4013 = vmatprep.mubr.msk.bf16.mxu0 %vm279_vm1, %v4820_v0  ;;  %4067 = vmatprep.mubr.msk.bf16.mxu1 %vm279_vm1, %v4820_v0 }
 0x10f   : > { %4014 = vmatmul.mubr.msk.bf16.gmra.mrb[44].mxu0 %vm279_vm1, %v4831_v1  ;;  %4068 = vmatmul.mubr.msk.bf16.gmra.mrb[44].mxu1 %vm279_vm1, %v4831_v1 }
 0x110   : > { %4019 = vmatprep.mubr.msk.bf16.mxu0 %vm279_vm1, %v4834_v2  ;;  %4073 = vmatprep.mubr.msk.bf16.mxu1 %vm279_vm1, %v4834_v2 }
 0x117   : > { %4020 = vmatmul.mubr.msk.bf16.vlgmr.msra.gmra.mrb[32].mxu0 %vm279_vm1, %v4845_v3  ;;  %4074 = vmatmul.mubr.msk.bf16.vlgmr.msra.gmra.mrb[32].mxu1 %vm279_vm1, %v4845_v3 }
 0x118   : > { %4023 = vmatprep.mubr.msk.bf16.mxu0 %vm279_vm1, %v4850_v6  ;;  %4077 = vmatprep.mubr.msk.bf16.mxu1 %vm279_vm1, %v4850_v6 }
 0x11f   : > { %4024 = vmatmul.mubr.msk.bf16.gmra.mrb[36].mxu0 %vm279_vm1, %v4869_v9  ;;  %4078 = vmatmul.mubr.msk.bf16.gmra.mrb[36].mxu1 %vm279_vm1, %v4869_v9 }
 0x120   : > { %4027 = vmatprep.mubr.msk.bf16.mxu0 %vm279_vm1, %v4872_v10  ;;  %4081 = vmatprep.mubr.msk.bf16.mxu1 %vm279_vm1, %v4872_v10 }
 0x127   : > { %4028 = vmatmul.mubr.msk.bf16.gmra.mrb[40].mxu0 %vm279_vm1, %v4883_v11  ;;  %4082 = vmatmul.mubr.msk.bf16.gmra.mrb[40].mxu1 %vm279_vm1, %v4883_v11 }
 0x128   : > { %4031 = vmatprep.mubr.msk.bf16.mxu0 %vm279_vm1, %v4886_v12  ;;  %4085 = vmatprep.mubr.msk.bf16.mxu1 %vm279_vm1, %v4886_v12 }
 0x12a   : > { %v3805_v22 = vpop.f32.mrb[0].mxu0  ;;  %v3859_v23 = vpop.f32.mrb[0].mxu1 }
 0x12b   : > { %v692_v24 = vpop.f32.mrb[1].mxu0  ;;  %v5009_v25 = vpop.f32.mrb[1].mxu1  ;;  %v1095_v28 = vrot.slane %v3859_v23, 1 }
 0x12c   : > { %v3806_v26 = vpop.f32.mrb[2].mxu0  ;;  %v3860_v27 = vpop.f32.mrb[2].mxu1  ;;  %v1093_v32 = vrot.slane %v5009_v25, 1 }
 0x12d   : > { %v1096_v29 = vrot.slane %v3860_v27, 1  ;;  %v695_v30 = vpop.f32.mrb[3].mxu0  ;;  %v1017_v31 = vpop.f32.mrb[3].mxu1 }
 0x12e   : > { %v1094_v33 = vrot.slane %v1017_v31, 1 }
 0x12f   : > { %v1124_v34 = vsel %vm1111_vm2, %v1095_v28, %v1096_v29  ;;  %4032 = vmatmul.mubr.msk.bf16.gmra.mrb[44].mxu0 %vm279_vm1, %v4897_v13  ;;  %4086 = vmatmul.mubr.msk.bf16.gmra.mrb[44].mxu1 %vm279_vm1, %v4897_v13 }
 0x130   : > { %v5019_v35 = vadd.f32 %v3805_v22, %v1124_v34  ;;  %v1125_v36 = vsel %vm1111_vm2, %v1094_v33, %v1095_v28  ;;  %v1126_v37 = vsel %vm1111_vm2, %v1093_v32, %v1094_v33 }
 0x131   : > { %v5027_v38 = vadd.f32 %v1126_v37, %v692_v24  ;;  %v5029_v39 = vadd.f32 %v1125_v36, %v695_v30 }
 0x132   : > { %v3809_v40 = vpop.f32.mrb[4].mxu0  ;;  %v3863_v41 = vpop.f32.mrb[4].mxu1 }
 0x133   : > { %v708_v42 = vpop.f32.mrb[5].mxu0  ;;  %v1030_v43 = vpop.f32.mrb[5].mxu1  ;;  %v1099_v47 = vrot.slane %v3863_v41, 1 }
 0x134   : > { %v1097_v44 = vrot.slane %v1030_v43, 1  ;;  %v3810_v45 = vpop.f32.mrb[6].mxu0  ;;  %v3864_v46 = vpop.f32.mrb[6].mxu1 }
 0x135   : > { %v1100_v48 = vrot.slane %v3864_v46, 1  ;;  %v711_v49 = vpop.f32.mrb[7].mxu0  ;;  %v1033_v50 = vpop.f32.mrb[7].mxu1 }
 0x136   : > { %v1123_v51 = vsel %vm1111_vm2, %v1096_v29, %v1097_v44  ;;  %v1098_v52 = vrot.slane %v1033_v50, 1 }
 0x137   : > { %v5033_v53 = vadd.f32 %v3806_v26, %v1123_v51  ;;  %v1120_v54 = vsel %vm1111_vm2, %v1099_v47, %v1100_v48 }
 0x138   : > { %v5037_v55 = vadd.f32 %v3809_v40, %v1120_v54  ;;  %v1121_v56 = vsel %vm1111_vm2, %v1098_v52, %v1099_v47  ;;  %v1122_v57 = vsel %vm1111_vm2, %v1097_v44, %v1098_v52 }
 0x139   : > { %v5043_v58 = vadd.f32 %v1122_v57, %v708_v42  ;;  %v5045_v59 = vadd.f32 %v1121_v56, %v711_v49  ;;  %v5104_v57 = vld [vmem:[%s5344_s2] ss:$0 sm:$0xff] }
 0x13a   : > { %v3813_v60 = vpop.f32.mrb[8].mxu0  ;;  %v3867_v61 = vpop.f32.mrb[8].mxu1 }
 0x13b   : > { %v724_v62 = vpop.f32.mrb[9].mxu0  ;;  %v1046_v63 = vpop.f32.mrb[9].mxu1  ;;  %v1103_v3 = vrot.slane %v3867_v61, 1 }
 0x13c   : > { %v1101_v0 = vrot.slane %v1046_v63, 1  ;;  %v3814_v1 = vpop.f32.mrb[10].mxu0  ;;  %v3868_v2 = vpop.f32.mrb[10].mxu1 }
 0x13d   : > { %v1104_v4 = vrot.slane %v3868_v2, 1  ;;  %v727_v5 = vpop.f32.mrb[11].mxu0  ;;  %v1049_v6 = vpop.f32.mrb[11].mxu1 }
 0x13e   : > { %v1119_v7 = vsel %vm1111_vm2, %v1100_v48, %v1101_v0  ;;  %v1102_v8 = vrot.slane %v1049_v6, 1 }
 0x13f   : > { %v5049_v9 = vadd.f32 %v3810_v45, %v1119_v7  ;;  %v1116_v10 = vsel %vm1111_vm2, %v1103_v3, %v1104_v4 }
 0x140   : > { %v5053_v11 = vadd.f32 %v3813_v60, %v1116_v10  ;;  %v1117_v12 = vsel %vm1111_vm2, %v1102_v8, %v1103_v3  ;;  %v1118_v13 = vsel %vm1111_vm2, %v1101_v0, %v1102_v8 }
 0x141   : > { %v5059_v14 = vadd.f32 %v1118_v13, %v724_v62  ;;  %v5061_v15 = vadd.f32 %v1117_v12, %v727_v5 }
 0x142   : > { %v3817_v16 = vpop.f32.mrb[12].mxu0  ;;  %v3871_v17 = vpop.f32.mrb[12].mxu1 }
 0x143   : > { %v740_v18 = vpop.f32.mrb[13].mxu0  ;;  %v1062_v19 = vpop.f32.mrb[13].mxu1  ;;  %v1107_v24 = vrot.slane %v3871_v17, 1 }
 0x144   : > { %v1105_v20 = vrot.slane %v1062_v19, 1  ;;  %v3818_v22 = vpop.f32.mrb[14].mxu0  ;;  %v3872_v23 = vpop.f32.mrb[14].mxu1 }
 0x145   : > { %v1108_v26 = vrot.slane %v3872_v23, 1  ;;  %v743_v27 = vpop.f32.mrb[15].mxu0  ;;  %v1065_v28 = vpop.f32.mrb[15].mxu1 }
 0x146   : > { %v1115_v29 = vsel %vm1111_vm2, %v1104_v4, %v1105_v20  ;;  %v1106_v30 = vrot.slane %v1065_v28, 1 }
 0x147   : > { %v5065_v31 = vadd.f32 %v3814_v1, %v1115_v29  ;;  %v1112_v33 = vsel %vm1111_vm2, %v1107_v24, %v1108_v26  ;;  %v1127_v34 = vsel %vm1111_vm2, %v1108_v26, %v1093_v32 }
 0x148   : > { %v5073_v36 = vadd.f32 %v3817_v16, %v1112_v33  ;;  %v5075_v37 = vadd.f32 %v3818_v22, %v1127_v34  ;;  %v1113_v40 = vsel %vm1111_vm2, %v1106_v30, %v1107_v24  ;;  %v1114_v41 = vsel %vm1111_vm2, %v1105_v20, %v1106_v30 }
 0x149   : > { %v5081_v42 = vadd.f32 %v1114_v41, %v740_v18  ;;  %v5083_v43 = vadd.f32 %v1113_v40, %v743_v27 }
 0x18a   : > { %v3913_v25 = vpop.f32.mrb[16].mxu0  ;;  %v5086_v44 = vpop.f32.mrb[16].mxu1 }
 0x18b   : > { %v5088_v32 = vpop.f32.mrb[17].mxu0  ;;  %v5090_v45 = vpop.f32.mrb[17].mxu1  ;;  %v1468_v48 = vrot.slane %v3913_v25, 2 }
 0x18c   : > { %v3914_v46 = vpop.f32.mrb[18].mxu0  ;;  %v5094_v47 = vpop.f32.mrb[18].mxu1  ;;  %v1466_v52 = vrot.slane %v5088_v32, 2 }
 0x18d   : > { %v1469_v49 = vrot.slane %v3914_v46, 2  ;;  %v1390_v50 = vpop.f32.mrb[19].mxu0  ;;  %v5096_v51 = vpop.f32.mrb[19].mxu1 }
 0x18e   : > { %v1467_v54 = vrot.slane %v1390_v50, 2 }
 0x18f   : > { %v1495_v56 = vsel %vm1482_vm3, %v1468_v48, %v1469_v49 }
 0x190   : > { %v1501_v60 = vadd.f32 %v1495_v56, %v5019_v35  ;;  %v1496_v61 = vsel %vm1482_vm3, %v1467_v54, %v1468_v48  ;;  %v1497_v62 = vsel %vm1482_vm3, %v1466_v52, %v1467_v54 }
 0x191   : > { %v1499_v63 = vadd.f32 %v1497_v62, %v5027_v38  ;;  %v1500_v0 = vadd.f32 %v1496_v61, %v5029_v39 }
 0x192   : > { %v3917_v1 = vpop.f32.mrb[20].mxu0  ;;  %v5115_v2 = vpop.f32.mrb[20].mxu1  ;;  %v1523_v24 = vadd.f32 %v5104_v57, %v1501_v60 }
 0x193   : > { %v1521_v3 = vadd.f32 %v5104_v57, %v1499_v63  ;;  %v1522_v35 = vadd.f32 %v5104_v57, %v1500_v0  ;;  %v1403_v4 = vpop.f32.mrb[21].mxu0  ;;  %v5119_v5 = vpop.f32.mrb[21].mxu1  ;;  %v1472_v8 = vrot.slane %v3917_v1, 2 }
 0x194   : > { %v1470_v6 = vrot.slane %v1403_v4, 2  ;;  %v3918_v38 = vpop.f32.mrb[22].mxu0  ;;  %v5126_v7 = vpop.f32.mrb[22].mxu1 }
 0x195   : > { %v3511_v39 = vpack.c.bf16 %v1522_v35, %v1521_v3  ;;  %v1473_v10 = vrot.slane %v3918_v38, 2  ;;  %v1406_v12 = vpop.f32.mrb[23].mxu0  ;;  %v5128_v13 = vpop.f32.mrb[23].mxu1 }
 0x196   : > { %v1494_v16 = vsel %vm1482_vm3, %v1469_v49, %v1470_v6  ;;  %v1471_v17 = vrot.slane %v1406_v12, 2 }
 0x197   : > { %3512 = vst [vmem:[%s5124_s27] sm:$0xff] %v3511_v39   ;;  %v1502_v18 = vadd.f32 %v1494_v16, %v5033_v53  ;;  %v1491_v19 = vsel %vm1482_vm3, %v1472_v8, %v1473_v10 }
 0x198   : > { %v1505_v20 = vadd.f32 %v1491_v19, %v5037_v55  ;;  %v1492_v22 = vsel %vm1482_vm3, %v1471_v17, %v1472_v8  ;;  %v1493_v23 = vsel %vm1482_vm3, %v1470_v6, %v1471_v17 }
 0x199   : > { %v1524_v26 = vadd.f32 %v5104_v57, %v1502_v18  ;;  %v1503_v27 = vadd.f32 %v1493_v23, %v5043_v58  ;;  %v1504_v53 = vadd.f32 %v1492_v22, %v5045_v59 }
 0x19a   : > { %v3921_v28 = vpop.f32.mrb[24].mxu0  ;;  %v5145_v29 = vpop.f32.mrb[24].mxu1  ;;  %v1527_v1 = vadd.f32 %v5104_v57, %v1505_v20 }
 0x19b   : > { %v3516_v30 = vpack.c.bf16 %v1524_v26, %v1523_v24  ;;  %v1525_v55 = vadd.f32 %v5104_v57, %v1503_v27  ;;  %v1526_v33 = vadd.f32 %v5104_v57, %v1504_v53  ;;  %v1419_v34 = vpop.f32.mrb[25].mxu0  ;;  %v5149_v40 = vpop.f32.mrb[25].mxu1  ;;  %v1476_v48 = vrot.slane %v3921_v28, 2 }
 0x19c   : > { %v1474_v41 = vrot.slane %v1419_v34, 2  ;;  %v3922_v25 = vpop.f32.mrb[26].mxu0  ;;  %v5151_v46 = vpop.f32.mrb[26].mxu1 }
 0x19d   : > { %3588 = vst [vmem:[%s5124_s27 + $0x8] sm:$0xff] %v3516_v30   ;;  %v3521_v58 = vpack.c.bf16 %v1526_v33, %v1525_v55  ;;  %v1477_v59 = vrot.slane %v3922_v25, 2  ;;  %v1422_v49 = vpop.f32.mrb[27].mxu0  ;;  %v5154_v50 = vpop.f32.mrb[27].mxu1 }
 0x19e   : > { %v1490_v54 = vsel %vm1482_vm3, %v1473_v10, %v1474_v41  ;;  %v1475_v56 = vrot.slane %v1422_v49, 2 }
 0x19f   : > { %3589 = vst [vmem:[%s5124_s27 + $0x10] sm:$0xff] %v3521_v58   ;;  %v1506_v60 = vadd.f32 %v1490_v54, %v5049_v9  ;;  %v1487_v61 = vsel %vm1482_vm3, %v1476_v48, %v1477_v59 }
 0x1a0   : > { %v1509_v62 = vadd.f32 %v1487_v61, %v5053_v11  ;;  %v1488_v63 = vsel %vm1482_vm3, %v1475_v56, %v1476_v48  ;;  %v1489_v0 = vsel %vm1482_vm3, %v1474_v41, %v1475_v56 }
 0x1a1   : > { %v1528_v3 = vadd.f32 %v5104_v57, %v1506_v60  ;;  %v1507_v35 = vadd.f32 %v1489_v0, %v5059_v14  ;;  %v1508_v9 = vadd.f32 %v1488_v63, %v5061_v15 }
 0x1a2   : > { %v3925_v4 = vpop.f32.mrb[28].mxu0  ;;  %v5171_v6 = vpop.f32.mrb[28].mxu1  ;;  %v1531_v55 = vadd.f32 %v5104_v57, %v1509_v62 }
 0x1a3   : > { %v3526_v38 = vpack.c.bf16 %v1528_v3, %v1527_v1  ;;  %v1529_v11 = vadd.f32 %v5104_v57, %v1507_v35  ;;  %v1530_v39 = vadd.f32 %v5104_v57, %v1508_v9  ;;  %v1435_v8 = vpop.f32.mrb[29].mxu0  ;;  %v5175_v10 = vpop.f32.mrb[29].mxu1  ;;  %v1480_v18 = vrot.slane %v3925_v4, 2 }
 0x1a4   : > { %v1478_v12 = vrot.slane %v1435_v8, 2  ;;  %v3926_v16 = vpop.f32.mrb[30].mxu0  ;;  %v5177_v17 = vpop.f32.mrb[30].mxu1 }
 0x1a5   : > { %3590 = vst [vmem:[%s5124_s27 + $0x18] sm:$0xff] %v3526_v38   ;;  %v3531_v14 = vpack.c.bf16 %v1530_v39, %v1529_v11  ;;  %v1481_v15 = vrot.slane %v3926_v16, 2  ;;  %v1438_v19 = vpop.f32.mrb[31].mxu0  ;;  %v5180_v20 = vpop.f32.mrb[31].mxu1 }
 0x1a6   : > { %v1486_v22 = vsel %vm1482_vm3, %v1477_v59, %v1478_v12  ;;  %v1479_v23 = vrot.slane %v1438_v19, 2 }
 0x1a7   : > { %3591 = vst [vmem:[%s5124_s27 + $0x20] sm:$0xff] %v3531_v14   ;;  %v1510_v24 = vadd.f32 %v1486_v22, %v5065_v31  ;;  %v1483_v26 = vsel %vm1482_vm3, %v1480_v18, %v1481_v15  ;;  %v1498_v27 = vsel %vm1482_vm3, %v1481_v15, %v1466_v52 }
 0x1a8   : > { %v1513_v53 = vadd.f32 %v1483_v26, %v5073_v36  ;;  %v1514_v28 = vadd.f32 %v1498_v27, %v5075_v37  ;;  %v1484_v30 = vsel %vm1482_vm3, %v1479_v23, %v1480_v18  ;;  %v1485_v31 = vsel %vm1482_vm3, %v1478_v12, %v1479_v23 }
 0x1a9   : > { %v1532_v32 = vadd.f32 %v5104_v57, %v1510_v24  ;;  %v1511_v33 = vadd.f32 %v1485_v31, %v5081_v42  ;;  %v1512_v52 = vadd.f32 %v1484_v30, %v5083_v43 }
 0x1aa   : > { %v1535_v36 = vadd.f32 %v5104_v57, %v1513_v53  ;;  %v1536_v34 = vadd.f32 %v5104_v57, %v1514_v28 }
 0x1ab   : > { %v3536_v37 = vpack.c.bf16 %v1532_v32, %v1531_v55  ;;  %v1533_v41 = vadd.f32 %v5104_v57, %v1511_v33  ;;  %v1534_v25 = vadd.f32 %v5104_v57, %v1512_v52 }
 0x1ac   : > { %v3546_v58 = vpack.c.bf16 %v1536_v34, %v1535_v36 }
 0x1ad   : > { %3592 = vst [vmem:[%s5124_s27 + $0x28] sm:$0xff] %v3536_v37   ;;  %v3541_v48 = vpack.c.bf16 %v1534_v25, %v1533_v41 }
 0x1ae   : > { %3594 = vst [vmem:[%s5124_s27 + $0x38] sm:$0xff] %v3546_v58  }
 0x1af   : > { %3593 = vst [vmem:[%s5124_s27 + $0x30] sm:$0xff] %v3541_v48  }
 0x1ea   : > { %v4021_v59 = vpop.f32.mrb[32].mxu0  ;;  %v4075_v49 = vpop.f32.mrb[32].mxu1 }
 0x1eb   : > { %v5209_v54 = vpop.f32.mrb[33].mxu0  ;;  %v5211_v42 = vpop.f32.mrb[33].mxu1  ;;  %v2509_v60 = vrot.slane %v4021_v59, 1  ;;  %v2876_v61 = vrot.slane %v4075_v49, 2 }
 0x1ec   : > { %v4022_v43 = vpop.f32.mrb[34].mxu0  ;;  %v4076_v56 = vpop.f32.mrb[34].mxu1  ;;  %v2507_v3 = vrot.slane %v5209_v54, 1  ;;  %v2874_v4 = vrot.slane %v5211_v42, 2 }
 0x1ed   : > { %v2510_v62 = vrot.slane %v4022_v43, 1  ;;  %v2877_v63 = vrot.slane %v4076_v56, 2  ;;  %v2431_v0 = vpop.f32.mrb[35].mxu0  ;;  %v2798_v1 = vpop.f32.mrb[35].mxu1 }
 0x1ee   : > { %v2508_v35 = vrot.slane %v2431_v0, 1  ;;  %v2875_v9 = vrot.slane %v2798_v1, 2 }
 0x1ef   : > { %v2535_v38 = vsel %vm1111_vm2, %v2509_v60, %v2510_v62  ;;  %v2902_v11 = vsel %vm1482_vm3, %v2876_v61, %v2877_v63 }
 0x1f0   : > { %v2541_v39 = vadd.f32 %v5086_v44, %v2535_v38  ;;  %v2536_v8 = vsel %vm1111_vm2, %v2508_v35, %v2509_v60  ;;  %v2537_v12 = vsel %vm1111_vm2, %v2507_v3, %v2508_v35  ;;  %v2903_v16 = vsel %vm1482_vm3, %v2875_v9, %v2876_v61 }
 0x1f1   : > { %v2539_v14 = vadd.f32 %v2537_v12, %v5090_v45  ;;  %v2540_v18 = vadd.f32 %v2536_v8, %v5096_v51  ;;  %v2904_v44 = vsel %vm1482_vm3, %v2874_v4, %v2875_v9 }
 0x1f2   : > { %v2908_v15 = vadd.f32 %v2902_v11, %v2541_v39  ;;  %v4025_v19 = vpop.f32.mrb[36].mxu0  ;;  %v4079_v22 = vpop.f32.mrb[36].mxu1 }
 0x1f3   : > { %v2906_v23 = vadd.f32 %v2904_v44, %v2539_v14  ;;  %v2907_v24 = vadd.f32 %v2903_v16, %v2540_v18  ;;  %v2444_v26 = vpop.f32.mrb[37].mxu0  ;;  %v2811_v27 = vpop.f32.mrb[37].mxu1  ;;  %v2513_v53 = vrot.slane %v4025_v19, 1  ;;  %v2880_v28 = vrot.slane %v4079_v22, 2 }
 0x1f4   : > { %v2511_v30 = vrot.slane %v2444_v26, 1  ;;  %v2878_v31 = vrot.slane %v2811_v27, 2  ;;  %v4026_v55 = vpop.f32.mrb[38].mxu0  ;;  %v4080_v45 = vpop.f32.mrb[38].mxu1  ;;  %v2924_v38 = vadd.f32 %v5104_v57, %v2908_v15 }
 0x1f5   : > { %v2922_v51 = vadd.f32 %v5104_v57, %v2906_v23  ;;  %v2923_v32 = vadd.f32 %v5104_v57, %v2907_v24  ;;  %v2514_v33 = vrot.slane %v4026_v55, 1  ;;  %v2881_v52 = vrot.slane %v4080_v45, 2  ;;  %v2447_v36 = vpop.f32.mrb[39].mxu0  ;;  %v2814_v34 = vpop.f32.mrb[39].mxu1 }
 0x1f6   : > { %v2534_v37 = vsel %vm1111_vm2, %v2510_v62, %v2511_v30  ;;  %v2901_v41 = vsel %vm1482_vm3, %v2877_v63, %v2878_v31  ;;  %v2512_v25 = vrot.slane %v2447_v36, 1  ;;  %v2879_v58 = vrot.slane %v2814_v34, 2 }
 0x1f7   : > { %v3551_v48 = vpack.c.bf16 %v2923_v32, %v2922_v51  ;;  %v2542_v59 = vadd.f32 %v5094_v47, %v2534_v37  ;;  %v2531_v49 = vsel %vm1111_vm2, %v2513_v53, %v2514_v33  ;;  %v2898_v43 = vsel %vm1482_vm3, %v2880_v28, %v2881_v52 }
 0x1f8   : > { %v2545_v56 = vadd.f32 %v5115_v2, %v2531_v49  ;;  %v2532_v60 = vsel %vm1111_vm2, %v2512_v25, %v2513_v53  ;;  %v2533_v61 = vsel %vm1111_vm2, %v2511_v30, %v2512_v25  ;;  %v2899_v62 = vsel %vm1482_vm3, %v2879_v58, %v2880_v28 }
 0x1f9   : > { %3595 = vst [vmem:[%s5124_s27 + $0x40] sm:$0xff] %v3551_v48   ;;  %v2909_v63 = vadd.f32 %v2901_v41, %v2542_v59  ;;  %v2543_v47 = vadd.f32 %v2533_v61, %v5119_v5  ;;  %v2544_v0 = vadd.f32 %v2532_v60, %v5128_v13  ;;  %v2900_v1 = vsel %vm1482_vm3, %v2878_v31, %v2879_v58 }
 0x1fa   : > { %v2912_v35 = vadd.f32 %v2898_v43, %v2545_v56  ;;  %v4029_v2 = vpop.f32.mrb[40].mxu0  ;;  %v4083_v9 = vpop.f32.mrb[40].mxu1 }
 0x1fb   : > { %v2925_v11 = vadd.f32 %v5104_v57, %v2909_v63  ;;  %v2910_v39 = vadd.f32 %v2900_v1, %v2543_v47  ;;  %v2911_v8 = vadd.f32 %v2899_v62, %v2544_v0  ;;  %v2460_v12 = vpop.f32.mrb[41].mxu0  ;;  %v2827_v16 = vpop.f32.mrb[41].mxu1  ;;  %v2517_v14 = vrot.slane %v4029_v2, 1 }
 0x1fc   : > { %v2884_v18 = vrot.slane %v4083_v9, 2  ;;  %v2515_v5 = vrot.slane %v2460_v12, 1  ;;  %v2882_v44 = vrot.slane %v2827_v16, 2  ;;  %v4030_v13 = vpop.f32.mrb[42].mxu0  ;;  %v4084_v19 = vpop.f32.mrb[42].mxu1  ;;  %v2928_v49 = vadd.f32 %v5104_v57, %v2912_v35 }
 0x1fd   : > { %v3556_v22 = vpack.c.bf16 %v2925_v11, %v2924_v38  ;;  %v2926_v23 = vadd.f32 %v5104_v57, %v2910_v39  ;;  %v2927_v24 = vadd.f32 %v5104_v57, %v2911_v8  ;;  %v2518_v26 = vrot.slane %v4030_v13, 1  ;;  %v2463_v15 = vpop.f32.mrb[43].mxu0  ;;  %v2830_v27 = vpop.f32.mrb[43].mxu1 }
 0x1fe   : > { %v2530_v53 = vsel %vm1111_vm2, %v2514_v33, %v2515_v5  ;;  %v2897_v28 = vsel %vm1482_vm3, %v2881_v52, %v2882_v44  ;;  %v2885_v30 = vrot.slane %v4084_v19, 2  ;;  %v2516_v31 = vrot.slane %v2463_v15, 1 }
 0x1ff   : > { %3596 = vst [vmem:[%s5124_s27 + $0x48] sm:$0xff] %v3556_v22   ;;  %v3561_v55 = vpack.c.bf16 %v2927_v24, %v2926_v23  ;;  %v2546_v45 = vadd.f32 %v5126_v7, %v2530_v53  ;;  %v2527_v51 = vsel %vm1111_vm2, %v2517_v14, %v2518_v26  ;;  %v2883_v32 = vrot.slane %v2830_v27, 2 }
 0x200   : > { %v2549_v36 = vadd.f32 %v5145_v29, %v2527_v51  ;;  %v2894_v34 = vsel %vm1482_vm3, %v2884_v18, %v2885_v30  ;;  %v2528_v33 = vsel %vm1111_vm2, %v2516_v31, %v2517_v14  ;;  %v2529_v52 = vsel %vm1111_vm2, %v2515_v5, %v2516_v31 }
 0x201   : > { %3597 = vst [vmem:[%s5124_s27 + $0x50] sm:$0xff] %v3561_v55   ;;  %v2913_v37 = vadd.f32 %v2897_v28, %v2546_v45  ;;  %v2547_v41 = vadd.f32 %v2529_v52, %v5149_v40  ;;  %v2548_v7 = vadd.f32 %v2528_v33, %v5154_v50  ;;  %v2895_v25 = vsel %vm1482_vm3, %v2883_v32, %v2884_v18 }
 0x202   : > { %v2916_v58 = vadd.f32 %v2894_v34, %v2549_v36  ;;  %v2896_v29 = vsel %vm1482_vm3, %v2882_v44, %v2883_v32  ;;  %v4033_v48 = vpop.f32.mrb[44].mxu0  ;;  %v4087_v59 = vpop.f32.mrb[44].mxu1 }
 0x203   : > { %v2929_v43 = vadd.f32 %v5104_v57, %v2913_v37  ;;  %v2914_v56 = vadd.f32 %v2896_v29, %v2547_v41  ;;  %v2915_v60 = vadd.f32 %v2895_v25, %v2548_v7  ;;  %v2476_v61 = vpop.f32.mrb[45].mxu0  ;;  %v2843_v62 = vpop.f32.mrb[45].mxu1  ;;  %v2521_v40 = vrot.slane %v4033_v48, 1 }
 0x204   : > { %v2888_v50 = vrot.slane %v4087_v59, 2  ;;  %v2519_v63 = vrot.slane %v2476_v61, 1  ;;  %v2886_v47 = vrot.slane %v2843_v62, 2  ;;  %v4034_v0 = vpop.f32.mrb[46].mxu0  ;;  %v4088_v1 = vpop.f32.mrb[46].mxu1 }
 0x205   : > { %v3566_v2 = vpack.c.bf16 %v2929_v43, %v2928_v49  ;;  %v2930_v9 = vadd.f32 %v5104_v57, %v2914_v56  ;;  %v2931_v38 = vadd.f32 %v5104_v57, %v2915_v60  ;;  %v2522_v11 = vrot.slane %v4034_v0, 1  ;;  %v2479_v35 = vpop.f32.mrb[47].mxu0  ;;  %v2846_v39 = vpop.f32.mrb[47].mxu1 }
 0x206   : > { %v2526_v8 = vsel %vm1111_vm2, %v2518_v26, %v2519_v63  ;;  %v2893_v12 = vsel %vm1482_vm3, %v2885_v30, %v2886_v47  ;;  %v2889_v16 = vrot.slane %v4088_v1, 2  ;;  %v2520_v14 = vrot.slane %v2479_v35, 1 }
 0x207   : > { %3598 = vst [vmem:[%s5124_s27 + $0x58] sm:$0xff] %v3566_v2   ;;  %v3571_v18 = vpack.c.bf16 %v2931_v38, %v2930_v9  ;;  %v2550_v5 = vadd.f32 %v5151_v46, %v2526_v8  ;;  %v2523_v44 = vsel %vm1111_vm2, %v2521_v40, %v2522_v11  ;;  %v2538_v13 = vsel %vm1111_vm2, %v2522_v11, %v2507_v3 }
 0x208   : > { %v2553_v19 = vadd.f32 %v5171_v6, %v2523_v44  ;;  %v2554_v22 = vadd.f32 %v5177_v17, %v2538_v13  ;;  %v2890_v23 = vsel %vm1482_vm3, %v2888_v50, %v2889_v16  ;;  %v2905_v46 = vsel %vm1482_vm3, %v2889_v16, %v2874_v4 }
 0x209   : > { %3599 = vst [vmem:[%s5124_s27 + $0x60] sm:$0xff] %v3571_v18   ;;  %v2917_v24 = vadd.f32 %v2893_v12, %v2550_v5  ;;  %v2524_v54 = vsel %vm1111_vm2, %v2520_v14, %v2521_v40  ;;  %v2525_v3 = vsel %vm1111_vm2, %v2519_v63, %v2520_v14  ;;  %v2887_v26 = vrot.slane %v2846_v39, 2 }
 0x20a   : > { %v2920_v6 = vadd.f32 %v2890_v23, %v2553_v19  ;;  %v2921_v17 = vadd.f32 %v2905_v46, %v2554_v22  ;;  %v2551_v15 = vadd.f32 %v2525_v3, %v5175_v10  ;;  %v2552_v42 = vadd.f32 %v2524_v54, %v5180_v20 }
 0x20b   : > { %v2932_v4 = vadd.f32 %v5104_v57, %v2916_v58  ;;  %v2933_v27 = vadd.f32 %v5104_v57, %v2917_v24  ;;  %v2891_v53 = vsel %vm1482_vm3, %v2887_v26, %v2888_v50  ;;  %v2892_v28 = vsel %vm1482_vm3, %v2886_v47, %v2887_v26 }
 0x20c   : > { %v2936_v30 = vadd.f32 %v5104_v57, %v2920_v6  ;;  %v2937_v31 = vadd.f32 %v5104_v57, %v2921_v17  ;;  %v2918_v55 = vadd.f32 %v2892_v28, %v2551_v15  ;;  %v2919_v45 = vadd.f32 %v2891_v53, %v2552_v42 }
 0x20d   : > { %v3576_v10 = vpack.c.bf16 %v2933_v27, %v2932_v4 }
 0x20e   : > { %v3586_v51 = vpack.c.bf16 %v2937_v31, %v2936_v30  ;;  %v2934_v20 = vadd.f32 %v5104_v57, %v2918_v55  ;;  %v2935_v32 = vadd.f32 %v5104_v57, %v2919_v45 }
 0x20f   : > { %3600 = vst [vmem:[%s5124_s27 + $0x68] sm:$0xff] %v3576_v10  }
 0x210   : > { %3602 = vst [vmem:[%s5124_s27 + $0x78] sm:$0xff] %v3586_v51   ;;  %v3581_v36 = vpack.c.bf16 %v2935_v32, %v2934_v20 }
 0x212   : > { %3601 = vst [vmem:[%s5124_s27 + $0x70] sm:$0xff] %v3581_v36  }
 0x213 PF: > { %s13_s16 = sadd.s32 1, %s4426_s16   ;;  %s5346_s12 = smov %s4418_s14 }
 0x214   : > { %p10_p7 = scmp.ge.s32.totalorder %s13_s16, 6   ;;  %s5347_s13 = smov %s4422_s15 }
 0x215   : > { %s5348_s14 = smov %s5351_s17  ;;  %s5349_s15 = smov %s5355_s18 }
 0x216   :  { %12 = sbr.rel (!%p10_p7) target bundleno = 3 (0x3), region = 76 }

</bundles_post_ra>
